<compile_context>
chip_gen: v7x
topology: tpu7x:2x2x1
jax: 0.10.0
libtpu: 0.0.40
codegen_flags: <defaults>
</compile_context>

<pallas_src>
import jax
import jax.numpy as jnp
from jax.experimental import pallas as pl
from jax.experimental.pallas import tpu as pltpu

LANES = 128


def _cdiv(a, b):
    return (a + b - 1) // b


def _choose_tile(n_sub, batch, tb_max=256, min_steps=8):
    """Sub-blocks (rows of 128 lanes) per spatial tile.  Pure Python / static."""
    tb = min(tb_max, n_sub)
    # Shrink for small workloads so the grid has >= min_steps steps in total:
    # keeps both v7x TensorCores fed and lets the BlockSpec pipeline overlap
    # DMA with compute even at batch=1 / small images.
    while tb > 8 and batch * _cdiv(n_sub, tb) < min_steps:
        tb //= 2
    if tb < n_sub:
        # Partial tiles: second-to-last block dim must be a multiple of 8.
        tb = max(8, (tb // 8) * 8)
    return tb


def sam_kernel(x1_ref, x2_ref, w1_ref, b1_ref, w2_ref, b2_ref, o_ref):
    """One (batch, spatial-tile) grid step.

    x1_ref / x2_ref : (1, C, tb, 128) dense spatial tiles in VMEM.
    w1_ref (4, hid), b1_ref (hid,), w2_ref (2, hid), b2_ref (2,) : SMEM scalars
      (w1 already has 1/C folded into its mean rows).
    o_ref           : (1, 2, tb, 128) merged output (spatial_x1, spatial_x2).
    """
    C = x1_ref.shape[1]
    hid = b1_ref.shape[0]

    def channel_sum_max(ref):
        # Static channel axis (a leading, non-tiled dim) -> C-1 dense
        # full-vreg adds / maxes; reduces over the logical C rows only.
        first = ref[0, 0]                       # (tb, 128)
        s, m = first, first
        for c in range(1, C):
            row = ref[0, c]
            s = s + row
            m = jnp.maximum(m, row)
        return s, m                             # channel sum (1/C in w1), max

    sum1, max1 = channel_sum_max(x1_ref)
    sum2, max2 = channel_sum_max(x2_ref)

    # 1x1 convs (4 -> hid -> 2) + ReLU as scalar-weight FMAs accumulated over
    # hid: every vector op is a dense (tb, 128) slab, no (hid, T) temporary.
    o0 = jnp.full_like(sum1, b2_ref[0])
    o1 = jnp.full_like(sum1, b2_ref[1])
    for k in range(hid):
        hk = (w1_ref[0, k] * sum1 + w1_ref[1, k] * max1 +
              w1_ref[2, k] * sum2 + w1_ref[3, k] * max2 + b1_ref[k])
        hk = jnp.maximum(hk, 0.0)
        o0 = o0 + w2_ref[0, k] * hk
        o1 = o1 + w2_ref[1, k] * hk

    # Sigmoid with both exp and the divide kept on the EUP slot.
    o_ref[0, 0, :, :] = pl.reciprocal(1.0 + jnp.exp(-o0), approx=True)
    o_ref[0, 1, :, :] = pl.reciprocal(1.0 + jnp.exp(-o1), approx=True)


@jax.jit
def sam_forward(x1, x2, w1, b1, w2, b2):
    B, C, H, W = x1.shape
    hid = w1.shape[0]
    HW = H * W

    # Dense (n_sub, 128) spatial layout.  Free contiguous reshape when
    # HW % 128 == 0 (the common case); otherwise a one-time tail pad.
    if HW % LANES == 0:
        hw_pad = HW
        x1f = x1.reshape(B, C, hw_pad // LANES, LANES)
        x2f = x2.reshape(B, C, hw_pad // LANES, LANES)
    else:
        # TODO(synk): this branch copies the inputs once; only hit when H*W
        # is not a multiple of 128.
        hw_pad = _cdiv(HW, LANES) * LANES
        pad = ((0, 0), (0, 0), (0, hw_pad - HW))
        x1f = jnp.pad(x1.reshape(B, C, HW), pad).reshape(B, C, hw_pad // LANES, LANES)
        x2f = jnp.pad(x2.reshape(B, C, HW), pad).reshape(B, C, hw_pad // LANES, LANES)
    n_sub = hw_pad // LANES

    tb = _choose_tile(n_sub, B)
    grid = (B, _cdiv(n_sub, tb))        # ragged last tile handled by Pallas

    # Trace-time weight prep (free): fold 1/C into the mean columns of w1 and
    # put the long (hid) axis last so SMEM padding stays tiny.
    scale = jnp.array([1.0 / C, 1.0, 1.0 / C, 1.0], dtype=w1.dtype)
    w1s = (w1 * scale[None, :]).T        # (4, hid)
    w2s = w2                             # (2, hid)

    grid_spec = pltpu.PrefetchScalarGridSpec(
        num_scalar_prefetch=0,
        grid=grid,
        in_specs=[
            pl.BlockSpec((1, C, tb, LANES), lambda b, s: (b, 0, s, 0)),  # x1 tile
            pl.BlockSpec((1, C, tb, LANES), lambda b, s: (b, 0, s, 0)),  # x2 tile
            pl.BlockSpec(memory_space=pltpu.MemorySpace.SMEM),           # w1 (4, hid)
            pl.BlockSpec(memory_space=pltpu.MemorySpace.SMEM),           # b1 (hid,)
            pl.BlockSpec(memory_space=pltpu.MemorySpace.SMEM),           # w2 (2, hid)
            pl.BlockSpec(memory_space=pltpu.MemorySpace.SMEM),           # b2 (2,)
        ],
        out_specs=pl.BlockSpec((1, 2, tb, LANES), lambda b, s: (b, 0, s, 0)),
    )

    out = pl.pallas_call(
        sam_kernel,
        grid_spec=grid_spec,
        out_shape=jax.ShapeDtypeStruct((B, 2, n_sub, LANES), jnp.float32),
        compiler_params=pltpu.CompilerParams(
            dimension_semantics=("parallel", "parallel"),
            vmem_limit_bytes=16 * 1024 * 1024,
        ),
    )(x1f, x2f, w1s, b1, w2s, b2)

    if hw_pad == HW:
        out = out.reshape(B, 2, H, W)
    else:
        out = out.reshape(B, 2, hw_pad)[:, :, :HW].reshape(B, 2, H, W)
    return out[:, 0:1], out[:, 1:2]


def init_params(key, reduction=4):
    # Deterministic synthetic init (shapes match nn.Conv2d(4, 4r, 1) and
    # nn.Conv2d(4r, 2, 1), with the trailing 1x1 kernel dims squeezed).
    hid = 4 * reduction
    k1, k2, k3, k4 = jax.random.split(key, 4)
    w1 = jax.random.normal(k1, (hid, 4), jnp.float32) * 0.5
    b1 = jax.random.normal(k2, (hid,), jnp.float32) * 0.1
    w2 = jax.random.normal(k3, (2, hid), jnp.float32) * 0.5
    b2 = jax.random.normal(k4, (2,), jnp.float32) * 0.1
    return w1, b1, w2, b2


def sam_reference(x1, x2, w1, b1, w2, b2):
    # Pure-JAX reference of the PyTorch forward for a sanity check.
    f = jnp.concatenate(
        [
            jnp.mean(x1, axis=1, keepdims=True),
            jnp.max(x1, axis=1, keepdims=True),
            jnp.mean(x2, axis=1, keepdims=True),
            jnp.max(x2, axis=1, keepdims=True),
        ],
        axis=1,
    )                                                 # (B, 4, H, W)
    h = jnp.einsum("oc,bchw->bohw", w1, f) + b1[None, :, None, None]
    h = jnp.maximum(h, 0.0)
    o = jnp.einsum("oc,bchw->bohw", w2, h) + b2[None, :, None, None]
    o = jax.nn.sigmoid(o)
    return o[:, 0:1], o[:, 1:2]


if __name__ == "__main__":
    key = jax.random.PRNGKey(0)
    kx1, kx2, kp = jax.random.split(key, 3)

    B, C, H, W = 2, 4, 16, 16
    x1 = jax.random.normal(kx1, (B, C, H, W), jnp.float32)
    x2 = jax.random.normal(kx2, (B, C, H, W), jnp.float32)
    w1, b1, w2, b2 = init_params(kp, reduction=4)

    sp_x1, sp_x2 = sam_forward(x1, x2, w1, b1, w2, b2)
    jax.block_until_ready((sp_x1, sp_x2))

    ref1, ref2 = sam_reference(x1, x2, w1, b1, w2, b2)
    assert sp_x1.shape == (B, 1, H, W) and sp_x2.shape == (B, 1, H, W)
    # approx=True reciprocal runs on the EUP; allow a little absolute slack
    # on the sigmoid outputs.
    assert float(jnp.max(jnp.abs(sp_x1 - ref1))) < 5e-3
    assert float(jnp.max(jnp.abs(sp_x2 - ref2))) < 5e-3

    print("KERNEL_OK")
</pallas_src>

<mosaic_0001>
module attributes {stable_mosaic.version = 11 : i64} {
  func.func @sam_kernel(%arg0: i32, %arg1: i32, %arg2: memref<1x4x2x128xf32, #tpu.memory_space<vmem>>, %arg3: memref<1x4x2x128xf32, #tpu.memory_space<vmem>>, %arg4: memref<4x16xf32, #tpu.memory_space<smem>>, %arg5: memref<16xf32, #tpu.memory_space<smem>>, %arg6: memref<2x16xf32, #tpu.memory_space<smem>>, %arg7: memref<2xf32, #tpu.memory_space<smem>>, %arg8: memref<1x2x2x128xf32, #tpu.memory_space<vmem>>) attributes {dimension_semantics = [#tpu.dimension_semantics<parallel>, #tpu.dimension_semantics<parallel>], iteration_bounds = array<i64: 2, 1>, scalar_prefetch = 0 : i64, scratch_operands = 0 : i64, tpu.core_type = #tpu.core_type<tc>, window_params = [{transform_indices = @transform_0, window_bounds = array<i64: 1, 4, 2, 128>}, {transform_indices = @transform_1, window_bounds = array<i64: 1, 4, 2, 128>}, {transform_indices = @transform_2, window_bounds = array<i64: 4, 16>}, {transform_indices = @transform_3, window_bounds = array<i64: 16>}, {transform_indices = @transform_4, window_bounds = array<i64: 2, 16>}, {transform_indices = @transform_5, window_bounds = array<i64: 2>}, {transform_indices = @transform_6, window_bounds = array<i64: 1, 2, 2, 128>}]} {
    %c0 = arith.constant 0 : index
    %c0_0 = arith.constant 0 : index
    %c0_1 = arith.constant 0 : index
    %c0_2 = arith.constant 0 : index
    %0 = vector.load %arg2[%c0, %c0_0, %c0_1, %c0_2] : memref<1x4x2x128xf32, #tpu.memory_space<vmem>>, vector<1x1x2x128xf32>
    %1 = vector.shape_cast %0 : vector<1x1x2x128xf32> to vector<2x128xf32>
    %c0_3 = arith.constant 0 : index
    %c1 = arith.constant 1 : index
    %c0_4 = arith.constant 0 : index
    %c0_5 = arith.constant 0 : index
    %2 = vector.load %arg2[%c0_3, %c1, %c0_4, %c0_5] : memref<1x4x2x128xf32, #tpu.memory_space<vmem>>, vector<1x1x2x128xf32>
    %3 = vector.shape_cast %2 : vector<1x1x2x128xf32> to vector<2x128xf32>
    %4 = arith.addf %1, %3 : vector<2x128xf32>
    %5 = arith.maximumf %1, %3 : vector<2x128xf32>
    %c0_6 = arith.constant 0 : index
    %c2 = arith.constant 2 : index
    %c0_7 = arith.constant 0 : index
    %c0_8 = arith.constant 0 : index
    %6 = vector.load %arg2[%c0_6, %c2, %c0_7, %c0_8] : memref<1x4x2x128xf32, #tpu.memory_space<vmem>>, vector<1x1x2x128xf32>
    %7 = vector.shape_cast %6 : vector<1x1x2x128xf32> to vector<2x128xf32>
    %8 = arith.addf %4, %7 : vector<2x128xf32>
    %9 = arith.maximumf %5, %7 : vector<2x128xf32>
    %c0_9 = arith.constant 0 : index
    %c3 = arith.constant 3 : index
    %c0_10 = arith.constant 0 : index
    %c0_11 = arith.constant 0 : index
    %10 = vector.load %arg2[%c0_9, %c3, %c0_10, %c0_11] : memref<1x4x2x128xf32, #tpu.memory_space<vmem>>, vector<1x1x2x128xf32>
    %11 = vector.shape_cast %10 : vector<1x1x2x128xf32> to vector<2x128xf32>
    %12 = arith.addf %8, %11 : vector<2x128xf32>
    %13 = arith.maximumf %9, %11 : vector<2x128xf32>
    %c0_12 = arith.constant 0 : index
    %c0_13 = arith.constant 0 : index
    %c0_14 = arith.constant 0 : index
    %c0_15 = arith.constant 0 : index
    %14 = vector.load %arg3[%c0_12, %c0_13, %c0_14, %c0_15] : memref<1x4x2x128xf32, #tpu.memory_space<vmem>>, vector<1x1x2x128xf32>
    %15 = vector.shape_cast %14 : vector<1x1x2x128xf32> to vector<2x128xf32>
    %c0_16 = arith.constant 0 : index
    %c1_17 = arith.constant 1 : index
    %c0_18 = arith.constant 0 : index
    %c0_19 = arith.constant 0 : index
    %16 = vector.load %arg3[%c0_16, %c1_17, %c0_18, %c0_19] : memref<1x4x2x128xf32, #tpu.memory_space<vmem>>, vector<1x1x2x128xf32>
    %17 = vector.shape_cast %16 : vector<1x1x2x128xf32> to vector<2x128xf32>
    %18 = arith.addf %15, %17 : vector<2x128xf32>
    %19 = arith.maximumf %15, %17 : vector<2x128xf32>
    %c0_20 = arith.constant 0 : index
    %c2_21 = arith.constant 2 : index
    %c0_22 = arith.constant 0 : index
    %c0_23 = arith.constant 0 : index
    %20 = vector.load %arg3[%c0_20, %c2_21, %c0_22, %c0_23] : memref<1x4x2x128xf32, #tpu.memory_space<vmem>>, vector<1x1x2x128xf32>
    %21 = vector.shape_cast %20 : vector<1x1x2x128xf32> to vector<2x128xf32>
    %22 = arith.addf %18, %21 : vector<2x128xf32>
    %23 = arith.maximumf %19, %21 : vector<2x128xf32>
    %c0_24 = arith.constant 0 : index
    %c3_25 = arith.constant 3 : index
    %c0_26 = arith.constant 0 : index
    %c0_27 = arith.constant 0 : index
    %24 = vector.load %arg3[%c0_24, %c3_25, %c0_26, %c0_27] : memref<1x4x2x128xf32, #tpu.memory_space<vmem>>, vector<1x1x2x128xf32>
    %25 = vector.shape_cast %24 : vector<1x1x2x128xf32> to vector<2x128xf32>
    %26 = arith.addf %22, %25 : vector<2x128xf32>
    %27 = arith.maximumf %23, %25 : vector<2x128xf32>
    %c0_28 = arith.constant 0 : index
    %28 = memref.load %arg7[%c0_28] : memref<2xf32, #tpu.memory_space<smem>>
    %29 = vector.broadcast %28 : f32 to vector<2x128xf32>
    %c1_29 = arith.constant 1 : index
    %30 = memref.load %arg7[%c1_29] : memref<2xf32, #tpu.memory_space<smem>>
    %31 = vector.broadcast %30 : f32 to vector<2x128xf32>
    %c0_30 = arith.constant 0 : index
    %c0_31 = arith.constant 0 : index
    %32 = memref.load %arg4[%c0_30, %c0_31] : memref<4x16xf32, #tpu.memory_space<smem>>
    %33 = vector.broadcast %32 : f32 to vector<2x128xf32>
    %34 = arith.mulf %33, %12 : vector<2x128xf32>
    %c1_32 = arith.constant 1 : index
    %c0_33 = arith.constant 0 : index
    %35 = memref.load %arg4[%c1_32, %c0_33] : memref<4x16xf32, #tpu.memory_space<smem>>
    %36 = vector.broadcast %35 : f32 to vector<2x128xf32>
    %37 = arith.mulf %36, %13 : vector<2x128xf32>
    %38 = arith.addf %34, %37 : vector<2x128xf32>
    %c2_34 = arith.constant 2 : index
    %c0_35 = arith.constant 0 : index
    %39 = memref.load %arg4[%c2_34, %c0_35] : memref<4x16xf32, #tpu.memory_space<smem>>
    %40 = vector.broadcast %39 : f32 to vector<2x128xf32>
    %41 = arith.mulf %40, %26 : vector<2x128xf32>
    %42 = arith.addf %38, %41 : vector<2x128xf32>
    %c3_36 = arith.constant 3 : index
    %c0_37 = arith.constant 0 : index
    %43 = memref.load %arg4[%c3_36, %c0_37] : memref<4x16xf32, #tpu.memory_space<smem>>
    %44 = vector.broadcast %43 : f32 to vector<2x128xf32>
    %45 = arith.mulf %44, %27 : vector<2x128xf32>
    %46 = arith.addf %42, %45 : vector<2x128xf32>
    %c0_38 = arith.constant 0 : index
    %47 = memref.load %arg5[%c0_38] : memref<16xf32, #tpu.memory_space<smem>>
    %48 = vector.broadcast %47 : f32 to vector<2x128xf32>
    %49 = arith.addf %46, %48 : vector<2x128xf32>
    %cst = arith.constant 0.000000e+00 : f32
    %50 = vector.broadcast %cst : f32 to vector<2x128xf32>
    %51 = arith.maximumf %49, %50 : vector<2x128xf32>
    %c0_39 = arith.constant 0 : index
    %c0_40 = arith.constant 0 : index
    %52 = memref.load %arg6[%c0_39, %c0_40] : memref<2x16xf32, #tpu.memory_space<smem>>
    %53 = vector.broadcast %52 : f32 to vector<2x128xf32>
    %54 = arith.mulf %53, %51 : vector<2x128xf32>
    %55 = arith.addf %29, %54 : vector<2x128xf32>
    %c1_41 = arith.constant 1 : index
    %c0_42 = arith.constant 0 : index
    %56 = memref.load %arg6[%c1_41, %c0_42] : memref<2x16xf32, #tpu.memory_space<smem>>
    %57 = vector.broadcast %56 : f32 to vector<2x128xf32>
    %58 = arith.mulf %57, %51 : vector<2x128xf32>
    %59 = arith.addf %31, %58 : vector<2x128xf32>
    %c0_43 = arith.constant 0 : index
    %c1_44 = arith.constant 1 : index
    %60 = memref.load %arg4[%c0_43, %c1_44] : memref<4x16xf32, #tpu.memory_space<smem>>
    %61 = vector.broadcast %60 : f32 to vector<2x128xf32>
    %62 = arith.mulf %61, %12 : vector<2x128xf32>
    %c1_45 = arith.constant 1 : index
    %c1_46 = arith.constant 1 : index
    %63 = memref.load %arg4[%c1_45, %c1_46] : memref<4x16xf32, #tpu.memory_space<smem>>
    %64 = vector.broadcast %63 : f32 to vector<2x128xf32>
    %65 = arith.mulf %64, %13 : vector<2x128xf32>
    %66 = arith.addf %62, %65 : vector<2x128xf32>
    %c2_47 = arith.constant 2 : index
    %c1_48 = arith.constant 1 : index
    %67 = memref.load %arg4[%c2_47, %c1_48] : memref<4x16xf32, #tpu.memory_space<smem>>
    %68 = vector.broadcast %67 : f32 to vector<2x128xf32>
    %69 = arith.mulf %68, %26 : vector<2x128xf32>
    %70 = arith.addf %66, %69 : vector<2x128xf32>
    %c3_49 = arith.constant 3 : index
    %c1_50 = arith.constant 1 : index
    %71 = memref.load %arg4[%c3_49, %c1_50] : memref<4x16xf32, #tpu.memory_space<smem>>
    %72 = vector.broadcast %71 : f32 to vector<2x128xf32>
    %73 = arith.mulf %72, %27 : vector<2x128xf32>
    %74 = arith.addf %70, %73 : vector<2x128xf32>
    %c1_51 = arith.constant 1 : index
    %75 = memref.load %arg5[%c1_51] : memref<16xf32, #tpu.memory_space<smem>>
    %76 = vector.broadcast %75 : f32 to vector<2x128xf32>
    %77 = arith.addf %74, %76 : vector<2x128xf32>
    %cst_52 = arith.constant 0.000000e+00 : f32
    %78 = vector.broadcast %cst_52 : f32 to vector<2x128xf32>
    %79 = arith.maximumf %77, %78 : vector<2x128xf32>
    %c0_53 = arith.constant 0 : index
    %c1_54 = arith.constant 1 : index
    %80 = memref.load %arg6[%c0_53, %c1_54] : memref<2x16xf32, #tpu.memory_space<smem>>
    %81 = vector.broadcast %80 : f32 to vector<2x128xf32>
    %82 = arith.mulf %81, %79 : vector<2x128xf32>
    %83 = arith.addf %55, %82 : vector<2x128xf32>
    %c1_55 = arith.constant 1 : index
    %c1_56 = arith.constant 1 : index
    %84 = memref.load %arg6[%c1_55, %c1_56] : memref<2x16xf32, #tpu.memory_space<smem>>
    %85 = vector.broadcast %84 : f32 to vector<2x128xf32>
    %86 = arith.mulf %85, %79 : vector<2x128xf32>
    %87 = arith.addf %59, %86 : vector<2x128xf32>
    %c0_57 = arith.constant 0 : index
    %c2_58 = arith.constant 2 : index
    %88 = memref.load %arg4[%c0_57, %c2_58] : memref<4x16xf32, #tpu.memory_space<smem>>
    %89 = vector.broadcast %88 : f32 to vector<2x128xf32>
    %90 = arith.mulf %89, %12 : vector<2x128xf32>
    %c1_59 = arith.constant 1 : index
    %c2_60 = arith.constant 2 : index
    %91 = memref.load %arg4[%c1_59, %c2_60] : memref<4x16xf32, #tpu.memory_space<smem>>
    %92 = vector.broadcast %91 : f32 to vector<2x128xf32>
    %93 = arith.mulf %92, %13 : vector<2x128xf32>
    %94 = arith.addf %90, %93 : vector<2x128xf32>
    %c2_61 = arith.constant 2 : index
    %c2_62 = arith.constant 2 : index
    %95 = memref.load %arg4[%c2_61, %c2_62] : memref<4x16xf32, #tpu.memory_space<smem>>
    %96 = vector.broadcast %95 : f32 to vector<2x128xf32>
    %97 = arith.mulf %96, %26 : vector<2x128xf32>
    %98 = arith.addf %94, %97 : vector<2x128xf32>
    %c3_63 = arith.constant 3 : index
    %c2_64 = arith.constant 2 : index
    %99 = memref.load %arg4[%c3_63, %c2_64] : memref<4x16xf32, #tpu.memory_space<smem>>
    %100 = vector.broadcast %99 : f32 to vector<2x128xf32>
    %101 = arith.mulf %100, %27 : vector<2x128xf32>
    %102 = arith.addf %98, %101 : vector<2x128xf32>
    %c2_65 = arith.constant 2 : index
    %103 = memref.load %arg5[%c2_65] : memref<16xf32, #tpu.memory_space<smem>>
    %104 = vector.broadcast %103 : f32 to vector<2x128xf32>
    %105 = arith.addf %102, %104 : vector<2x128xf32>
    %cst_66 = arith.constant 0.000000e+00 : f32
    %106 = vector.broadcast %cst_66 : f32 to vector<2x128xf32>
    %107 = arith.maximumf %105, %106 : vector<2x128xf32>
    %c0_67 = arith.constant 0 : index
    %c2_68 = arith.constant 2 : index
    %108 = memref.load %arg6[%c0_67, %c2_68] : memref<2x16xf32, #tpu.memory_space<smem>>
    %109 = vector.broadcast %108 : f32 to vector<2x128xf32>
    %110 = arith.mulf %109, %107 : vector<2x128xf32>
    %111 = arith.addf %83, %110 : vector<2x128xf32>
    %c1_69 = arith.constant 1 : index
    %c2_70 = arith.constant 2 : index
    %112 = memref.load %arg6[%c1_69, %c2_70] : memref<2x16xf32, #tpu.memory_space<smem>>
    %113 = vector.broadcast %112 : f32 to vector<2x128xf32>
    %114 = arith.mulf %113, %107 : vector<2x128xf32>
    %115 = arith.addf %87, %114 : vector<2x128xf32>
    %c0_71 = arith.constant 0 : index
    %c3_72 = arith.constant 3 : index
    %116 = memref.load %arg4[%c0_71, %c3_72] : memref<4x16xf32, #tpu.memory_space<smem>>
    %117 = vector.broadcast %116 : f32 to vector<2x128xf32>
    %118 = arith.mulf %117, %12 : vector<2x128xf32>
    %c1_73 = arith.constant 1 : index
    %c3_74 = arith.constant 3 : index
    %119 = memref.load %arg4[%c1_73, %c3_74] : memref<4x16xf32, #tpu.memory_space<smem>>
    %120 = vector.broadcast %119 : f32 to vector<2x128xf32>
    %121 = arith.mulf %120, %13 : vector<2x128xf32>
    %122 = arith.addf %118, %121 : vector<2x128xf32>
    %c2_75 = arith.constant 2 : index
    %c3_76 = arith.constant 3 : index
    %123 = memref.load %arg4[%c2_75, %c3_76] : memref<4x16xf32, #tpu.memory_space<smem>>
    %124 = vector.broadcast %123 : f32 to vector<2x128xf32>
    %125 = arith.mulf %124, %26 : vector<2x128xf32>
    %126 = arith.addf %122, %125 : vector<2x128xf32>
    %c3_77 = arith.constant 3 : index
    %c3_78 = arith.constant 3 : index
    %127 = memref.load %arg4[%c3_77, %c3_78] : memref<4x16xf32, #tpu.memory_space<smem>>
    %128 = vector.broadcast %127 : f32 to vector<2x128xf32>
    %129 = arith.mulf %128, %27 : vector<2x128xf32>
    %130 = arith.addf %126, %129 : vector<2x128xf32>
    %c3_79 = arith.constant 3 : index
    %131 = memref.load %arg5[%c3_79] : memref<16xf32, #tpu.memory_space<smem>>
    %132 = vector.broadcast %131 : f32 to vector<2x128xf32>
    %133 = arith.addf %130, %132 : vector<2x128xf32>
    %cst_80 = arith.constant 0.000000e+00 : f32
    %134 = vector.broadcast %cst_80 : f32 to vector<2x128xf32>
    %135 = arith.maximumf %133, %134 : vector<2x128xf32>
    %c0_81 = arith.constant 0 : index
    %c3_82 = arith.constant 3 : index
    %136 = memref.load %arg6[%c0_81, %c3_82] : memref<2x16xf32, #tpu.memory_space<smem>>
    %137 = vector.broadcast %136 : f32 to vector<2x128xf32>
    %138 = arith.mulf %137, %135 : vector<2x128xf32>
    %139 = arith.addf %111, %138 : vector<2x128xf32>
    %c1_83 = arith.constant 1 : index
    %c3_84 = arith.constant 3 : index
    %140 = memref.load %arg6[%c1_83, %c3_84] : memref<2x16xf32, #tpu.memory_space<smem>>
    %141 = vector.broadcast %140 : f32 to vector<2x128xf32>
    %142 = arith.mulf %141, %135 : vector<2x128xf32>
    %143 = arith.addf %115, %142 : vector<2x128xf32>
    %c0_85 = arith.constant 0 : index
    %c4 = arith.constant 4 : index
    %144 = memref.load %arg4[%c0_85, %c4] : memref<4x16xf32, #tpu.memory_space<smem>>
    %145 = vector.broadcast %144 : f32 to vector<2x128xf32>
    %146 = arith.mulf %145, %12 : vector<2x128xf32>
    %c1_86 = arith.constant 1 : index
    %c4_87 = arith.constant 4 : index
    %147 = memref.load %arg4[%c1_86, %c4_87] : memref<4x16xf32, #tpu.memory_space<smem>>
    %148 = vector.broadcast %147 : f32 to vector<2x128xf32>
    %149 = arith.mulf %148, %13 : vector<2x128xf32>
    %150 = arith.addf %146, %149 : vector<2x128xf32>
    %c2_88 = arith.constant 2 : index
    %c4_89 = arith.constant 4 : index
    %151 = memref.load %arg4[%c2_88, %c4_89] : memref<4x16xf32, #tpu.memory_space<smem>>
    %152 = vector.broadcast %151 : f32 to vector<2x128xf32>
    %153 = arith.mulf %152, %26 : vector<2x128xf32>
    %154 = arith.addf %150, %153 : vector<2x128xf32>
    %c3_90 = arith.constant 3 : index
    %c4_91 = arith.constant 4 : index
    %155 = memref.load %arg4[%c3_90, %c4_91] : memref<4x16xf32, #tpu.memory_space<smem>>
    %156 = vector.broadcast %155 : f32 to vector<2x128xf32>
    %157 = arith.mulf %156, %27 : vector<2x128xf32>
    %158 = arith.addf %154, %157 : vector<2x128xf32>
    %c4_92 = arith.constant 4 : index
    %159 = memref.load %arg5[%c4_92] : memref<16xf32, #tpu.memory_space<smem>>
    %160 = vector.broadcast %159 : f32 to vector<2x128xf32>
    %161 = arith.addf %158, %160 : vector<2x128xf32>
    %cst_93 = arith.constant 0.000000e+00 : f32
    %162 = vector.broadcast %cst_93 : f32 to vector<2x128xf32>
    %163 = arith.maximumf %161, %162 : vector<2x128xf32>
    %c0_94 = arith.constant 0 : index
    %c4_95 = arith.constant 4 : index
    %164 = memref.load %arg6[%c0_94, %c4_95] : memref<2x16xf32, #tpu.memory_space<smem>>
    %165 = vector.broadcast %164 : f32 to vector<2x128xf32>
    %166 = arith.mulf %165, %163 : vector<2x128xf32>
    %167 = arith.addf %139, %166 : vector<2x128xf32>
    %c1_96 = arith.constant 1 : index
    %c4_97 = arith.constant 4 : index
    %168 = memref.load %arg6[%c1_96, %c4_97] : memref<2x16xf32, #tpu.memory_space<smem>>
    %169 = vector.broadcast %168 : f32 to vector<2x128xf32>
    %170 = arith.mulf %169, %163 : vector<2x128xf32>
    %171 = arith.addf %143, %170 : vector<2x128xf32>
    %c0_98 = arith.constant 0 : index
    %c5 = arith.constant 5 : index
    %172 = memref.load %arg4[%c0_98, %c5] : memref<4x16xf32, #tpu.memory_space<smem>>
    %173 = vector.broadcast %172 : f32 to vector<2x128xf32>
    %174 = arith.mulf %173, %12 : vector<2x128xf32>
    %c1_99 = arith.constant 1 : index
    %c5_100 = arith.constant 5 : index
    %175 = memref.load %arg4[%c1_99, %c5_100] : memref<4x16xf32, #tpu.memory_space<smem>>
    %176 = vector.broadcast %175 : f32 to vector<2x128xf32>
    %177 = arith.mulf %176, %13 : vector<2x128xf32>
    %178 = arith.addf %174, %177 : vector<2x128xf32>
    %c2_101 = arith.constant 2 : index
    %c5_102 = arith.constant 5 : index
    %179 = memref.load %arg4[%c2_101, %c5_102] : memref<4x16xf32, #tpu.memory_space<smem>>
    %180 = vector.broadcast %179 : f32 to vector<2x128xf32>
    %181 = arith.mulf %180, %26 : vector<2x128xf32>
    %182 = arith.addf %178, %181 : vector<2x128xf32>
    %c3_103 = arith.constant 3 : index
    %c5_104 = arith.constant 5 : index
    %183 = memref.load %arg4[%c3_103, %c5_104] : memref<4x16xf32, #tpu.memory_space<smem>>
    %184 = vector.broadcast %183 : f32 to vector<2x128xf32>
    %185 = arith.mulf %184, %27 : vector<2x128xf32>
    %186 = arith.addf %182, %185 : vector<2x128xf32>
    %c5_105 = arith.constant 5 : index
    %187 = memref.load %arg5[%c5_105] : memref<16xf32, #tpu.memory_space<smem>>
    %188 = vector.broadcast %187 : f32 to vector<2x128xf32>
    %189 = arith.addf %186, %188 : vector<2x128xf32>
    %cst_106 = arith.constant 0.000000e+00 : f32
    %190 = vector.broadcast %cst_106 : f32 to vector<2x128xf32>
    %191 = arith.maximumf %189, %190 : vector<2x128xf32>
    %c0_107 = arith.constant 0 : index
    %c5_108 = arith.constant 5 : index
    %192 = memref.load %arg6[%c0_107, %c5_108] : memref<2x16xf32, #tpu.memory_space<smem>>
    %193 = vector.broadcast %192 : f32 to vector<2x128xf32>
    %194 = arith.mulf %193, %191 : vector<2x128xf32>
    %195 = arith.addf %167, %194 : vector<2x128xf32>
    %c1_109 = arith.constant 1 : index
    %c5_110 = arith.constant 5 : index
    %196 = memref.load %arg6[%c1_109, %c5_110] : memref<2x16xf32, #tpu.memory_space<smem>>
    %197 = vector.broadcast %196 : f32 to vector<2x128xf32>
    %198 = arith.mulf %197, %191 : vector<2x128xf32>
    %199 = arith.addf %171, %198 : vector<2x128xf32>
    %c0_111 = arith.constant 0 : index
    %c6 = arith.constant 6 : index
    %200 = memref.load %arg4[%c0_111, %c6] : memref<4x16xf32, #tpu.memory_space<smem>>
    %201 = vector.broadcast %200 : f32 to vector<2x128xf32>
    %202 = arith.mulf %201, %12 : vector<2x128xf32>
    %c1_112 = arith.constant 1 : index
    %c6_113 = arith.constant 6 : index
    %203 = memref.load %arg4[%c1_112, %c6_113] : memref<4x16xf32, #tpu.memory_space<smem>>
    %204 = vector.broadcast %203 : f32 to vector<2x128xf32>
    %205 = arith.mulf %204, %13 : vector<2x128xf32>
    %206 = arith.addf %202, %205 : vector<2x128xf32>
    %c2_114 = arith.constant 2 : index
    %c6_115 = arith.constant 6 : index
    %207 = memref.load %arg4[%c2_114, %c6_115] : memref<4x16xf32, #tpu.memory_space<smem>>
    %208 = vector.broadcast %207 : f32 to vector<2x128xf32>
    %209 = arith.mulf %208, %26 : vector<2x128xf32>
    %210 = arith.addf %206, %209 : vector<2x128xf32>
    %c3_116 = arith.constant 3 : index
    %c6_117 = arith.constant 6 : index
    %211 = memref.load %arg4[%c3_116, %c6_117] : memref<4x16xf32, #tpu.memory_space<smem>>
    %212 = vector.broadcast %211 : f32 to vector<2x128xf32>
    %213 = arith.mulf %212, %27 : vector<2x128xf32>
    %214 = arith.addf %210, %213 : vector<2x128xf32>
    %c6_118 = arith.constant 6 : index
    %215 = memref.load %arg5[%c6_118] : memref<16xf32, #tpu.memory_space<smem>>
    %216 = vector.broadcast %215 : f32 to vector<2x128xf32>
    %217 = arith.addf %214, %216 : vector<2x128xf32>
    %cst_119 = arith.constant 0.000000e+00 : f32
    %218 = vector.broadcast %cst_119 : f32 to vector<2x128xf32>
    %219 = arith.maximumf %217, %218 : vector<2x128xf32>
    %c0_120 = arith.constant 0 : index
    %c6_121 = arith.constant 6 : index
    %220 = memref.load %arg6[%c0_120, %c6_121] : memref<2x16xf32, #tpu.memory_space<smem>>
    %221 = vector.broadcast %220 : f32 to vector<2x128xf32>
    %222 = arith.mulf %221, %219 : vector<2x128xf32>
    %223 = arith.addf %195, %222 : vector<2x128xf32>
    %c1_122 = arith.constant 1 : index
    %c6_123 = arith.constant 6 : index
    %224 = memref.load %arg6[%c1_122, %c6_123] : memref<2x16xf32, #tpu.memory_space<smem>>
    %225 = vector.broadcast %224 : f32 to vector<2x128xf32>
    %226 = arith.mulf %225, %219 : vector<2x128xf32>
    %227 = arith.addf %199, %226 : vector<2x128xf32>
    %c0_124 = arith.constant 0 : index
    %c7 = arith.constant 7 : index
    %228 = memref.load %arg4[%c0_124, %c7] : memref<4x16xf32, #tpu.memory_space<smem>>
    %229 = vector.broadcast %228 : f32 to vector<2x128xf32>
    %230 = arith.mulf %229, %12 : vector<2x128xf32>
    %c1_125 = arith.constant 1 : index
    %c7_126 = arith.constant 7 : index
    %231 = memref.load %arg4[%c1_125, %c7_126] : memref<4x16xf32, #tpu.memory_space<smem>>
    %232 = vector.broadcast %231 : f32 to vector<2x128xf32>
    %233 = arith.mulf %232, %13 : vector<2x128xf32>
    %234 = arith.addf %230, %233 : vector<2x128xf32>
    %c2_127 = arith.constant 2 : index
    %c7_128 = arith.constant 7 : index
    %235 = memref.load %arg4[%c2_127, %c7_128] : memref<4x16xf32, #tpu.memory_space<smem>>
    %236 = vector.broadcast %235 : f32 to vector<2x128xf32>
    %237 = arith.mulf %236, %26 : vector<2x128xf32>
    %238 = arith.addf %234, %237 : vector<2x128xf32>
    %c3_129 = arith.constant 3 : index
    %c7_130 = arith.constant 7 : index
    %239 = memref.load %arg4[%c3_129, %c7_130] : memref<4x16xf32, #tpu.memory_space<smem>>
    %240 = vector.broadcast %239 : f32 to vector<2x128xf32>
    %241 = arith.mulf %240, %27 : vector<2x128xf32>
    %242 = arith.addf %238, %241 : vector<2x128xf32>
    %c7_131 = arith.constant 7 : index
    %243 = memref.load %arg5[%c7_131] : memref<16xf32, #tpu.memory_space<smem>>
    %244 = vector.broadcast %243 : f32 to vector<2x128xf32>
    %245 = arith.addf %242, %244 : vector<2x128xf32>
    %cst_132 = arith.constant 0.000000e+00 : f32
    %246 = vector.broadcast %cst_132 : f32 to vector<2x128xf32>
    %247 = arith.maximumf %245, %246 : vector<2x128xf32>
    %c0_133 = arith.constant 0 : index
    %c7_134 = arith.constant 7 : index
    %248 = memref.load %arg6[%c0_133, %c7_134] : memref<2x16xf32, #tpu.memory_space<smem>>
    %249 = vector.broadcast %248 : f32 to vector<2x128xf32>
    %250 = arith.mulf %249, %247 : vector<2x128xf32>
    %251 = arith.addf %223, %250 : vector<2x128xf32>
    %c1_135 = arith.constant 1 : index
    %c7_136 = arith.constant 7 : index
    %252 = memref.load %arg6[%c1_135, %c7_136] : memref<2x16xf32, #tpu.memory_space<smem>>
    %253 = vector.broadcast %252 : f32 to vector<2x128xf32>
    %254 = arith.mulf %253, %247 : vector<2x128xf32>
    %255 = arith.addf %227, %254 : vector<2x128xf32>
    %c0_137 = arith.constant 0 : index
    %c8 = arith.constant 8 : index
    %256 = memref.load %arg4[%c0_137, %c8] : memref<4x16xf32, #tpu.memory_space<smem>>
    %257 = vector.broadcast %256 : f32 to vector<2x128xf32>
    %258 = arith.mulf %257, %12 : vector<2x128xf32>
    %c1_138 = arith.constant 1 : index
    %c8_139 = arith.constant 8 : index
    %259 = memref.load %arg4[%c1_138, %c8_139] : memref<4x16xf32, #tpu.memory_space<smem>>
    %260 = vector.broadcast %259 : f32 to vector<2x128xf32>
    %261 = arith.mulf %260, %13 : vector<2x128xf32>
    %262 = arith.addf %258, %261 : vector<2x128xf32>
    %c2_140 = arith.constant 2 : index
    %c8_141 = arith.constant 8 : index
    %263 = memref.load %arg4[%c2_140, %c8_141] : memref<4x16xf32, #tpu.memory_space<smem>>
    %264 = vector.broadcast %263 : f32 to vector<2x128xf32>
    %265 = arith.mulf %264, %26 : vector<2x128xf32>
    %266 = arith.addf %262, %265 : vector<2x128xf32>
    %c3_142 = arith.constant 3 : index
    %c8_143 = arith.constant 8 : index
    %267 = memref.load %arg4[%c3_142, %c8_143] : memref<4x16xf32, #tpu.memory_space<smem>>
    %268 = vector.broadcast %267 : f32 to vector<2x128xf32>
    %269 = arith.mulf %268, %27 : vector<2x128xf32>
    %270 = arith.addf %266, %269 : vector<2x128xf32>
    %c8_144 = arith.constant 8 : index
    %271 = memref.load %arg5[%c8_144] : memref<16xf32, #tpu.memory_space<smem>>
    %272 = vector.broadcast %271 : f32 to vector<2x128xf32>
    %273 = arith.addf %270, %272 : vector<2x128xf32>
    %cst_145 = arith.constant 0.000000e+00 : f32
    %274 = vector.broadcast %cst_145 : f32 to vector<2x128xf32>
    %275 = arith.maximumf %273, %274 : vector<2x128xf32>
    %c0_146 = arith.constant 0 : index
    %c8_147 = arith.constant 8 : index
    %276 = memref.load %arg6[%c0_146, %c8_147] : memref<2x16xf32, #tpu.memory_space<smem>>
    %277 = vector.broadcast %276 : f32 to vector<2x128xf32>
    %278 = arith.mulf %277, %275 : vector<2x128xf32>
    %279 = arith.addf %251, %278 : vector<2x128xf32>
    %c1_148 = arith.constant 1 : index
    %c8_149 = arith.constant 8 : index
    %280 = memref.load %arg6[%c1_148, %c8_149] : memref<2x16xf32, #tpu.memory_space<smem>>
    %281 = vector.broadcast %280 : f32 to vector<2x128xf32>
    %282 = arith.mulf %281, %275 : vector<2x128xf32>
    %283 = arith.addf %255, %282 : vector<2x128xf32>
    %c0_150 = arith.constant 0 : index
    %c9 = arith.constant 9 : index
    %284 = memref.load %arg4[%c0_150, %c9] : memref<4x16xf32, #tpu.memory_space<smem>>
    %285 = vector.broadcast %284 : f32 to vector<2x128xf32>
    %286 = arith.mulf %285, %12 : vector<2x128xf32>
    %c1_151 = arith.constant 1 : index
    %c9_152 = arith.constant 9 : index
    %287 = memref.load %arg4[%c1_151, %c9_152] : memref<4x16xf32, #tpu.memory_space<smem>>
    %288 = vector.broadcast %287 : f32 to vector<2x128xf32>
    %289 = arith.mulf %288, %13 : vector<2x128xf32>
    %290 = arith.addf %286, %289 : vector<2x128xf32>
    %c2_153 = arith.constant 2 : index
    %c9_154 = arith.constant 9 : index
    %291 = memref.load %arg4[%c2_153, %c9_154] : memref<4x16xf32, #tpu.memory_space<smem>>
    %292 = vector.broadcast %291 : f32 to vector<2x128xf32>
    %293 = arith.mulf %292, %26 : vector<2x128xf32>
    %294 = arith.addf %290, %293 : vector<2x128xf32>
    %c3_155 = arith.constant 3 : index
    %c9_156 = arith.constant 9 : index
    %295 = memref.load %arg4[%c3_155, %c9_156] : memref<4x16xf32, #tpu.memory_space<smem>>
    %296 = vector.broadcast %295 : f32 to vector<2x128xf32>
    %297 = arith.mulf %296, %27 : vector<2x128xf32>
    %298 = arith.addf %294, %297 : vector<2x128xf32>
    %c9_157 = arith.constant 9 : index
    %299 = memref.load %arg5[%c9_157] : memref<16xf32, #tpu.memory_space<smem>>
    %300 = vector.broadcast %299 : f32 to vector<2x128xf32>
    %301 = arith.addf %298, %300 : vector<2x128xf32>
    %cst_158 = arith.constant 0.000000e+00 : f32
    %302 = vector.broadcast %cst_158 : f32 to vector<2x128xf32>
    %303 = arith.maximumf %301, %302 : vector<2x128xf32>
    %c0_159 = arith.constant 0 : index
    %c9_160 = arith.constant 9 : index
    %304 = memref.load %arg6[%c0_159, %c9_160] : memref<2x16xf32, #tpu.memory_space<smem>>
    %305 = vector.broadcast %304 : f32 to vector<2x128xf32>
    %306 = arith.mulf %305, %303 : vector<2x128xf32>
    %307 = arith.addf %279, %306 : vector<2x128xf32>
    %c1_161 = arith.constant 1 : index
    %c9_162 = arith.constant 9 : index
    %308 = memref.load %arg6[%c1_161, %c9_162] : memref<2x16xf32, #tpu.memory_space<smem>>
    %309 = vector.broadcast %308 : f32 to vector<2x128xf32>
    %310 = arith.mulf %309, %303 : vector<2x128xf32>
    %311 = arith.addf %283, %310 : vector<2x128xf32>
    %c0_163 = arith.constant 0 : index
    %c10 = arith.constant 10 : index
    %312 = memref.load %arg4[%c0_163, %c10] : memref<4x16xf32, #tpu.memory_space<smem>>
    %313 = vector.broadcast %312 : f32 to vector<2x128xf32>
    %314 = arith.mulf %313, %12 : vector<2x128xf32>
    %c1_164 = arith.constant 1 : index
    %c10_165 = arith.constant 10 : index
    %315 = memref.load %arg4[%c1_164, %c10_165] : memref<4x16xf32, #tpu.memory_space<smem>>
    %316 = vector.broadcast %315 : f32 to vector<2x128xf32>
    %317 = arith.mulf %316, %13 : vector<2x128xf32>
    %318 = arith.addf %314, %317 : vector<2x128xf32>
    %c2_166 = arith.constant 2 : index
    %c10_167 = arith.constant 10 : index
    %319 = memref.load %arg4[%c2_166, %c10_167] : memref<4x16xf32, #tpu.memory_space<smem>>
    %320 = vector.broadcast %319 : f32 to vector<2x128xf32>
    %321 = arith.mulf %320, %26 : vector<2x128xf32>
    %322 = arith.addf %318, %321 : vector<2x128xf32>
    %c3_168 = arith.constant 3 : index
    %c10_169 = arith.constant 10 : index
    %323 = memref.load %arg4[%c3_168, %c10_169] : memref<4x16xf32, #tpu.memory_space<smem>>
    %324 = vector.broadcast %323 : f32 to vector<2x128xf32>
    %325 = arith.mulf %324, %27 : vector<2x128xf32>
    %326 = arith.addf %322, %325 : vector<2x128xf32>
    %c10_170 = arith.constant 10 : index
    %327 = memref.load %arg5[%c10_170] : memref<16xf32, #tpu.memory_space<smem>>
    %328 = vector.broadcast %327 : f32 to vector<2x128xf32>
    %329 = arith.addf %326, %328 : vector<2x128xf32>
    %cst_171 = arith.constant 0.000000e+00 : f32
    %330 = vector.broadcast %cst_171 : f32 to vector<2x128xf32>
    %331 = arith.maximumf %329, %330 : vector<2x128xf32>
    %c0_172 = arith.constant 0 : index
    %c10_173 = arith.constant 10 : index
    %332 = memref.load %arg6[%c0_172, %c10_173] : memref<2x16xf32, #tpu.memory_space<smem>>
    %333 = vector.broadcast %332 : f32 to vector<2x128xf32>
    %334 = arith.mulf %333, %331 : vector<2x128xf32>
    %335 = arith.addf %307, %334 : vector<2x128xf32>
    %c1_174 = arith.constant 1 : index
    %c10_175 = arith.constant 10 : index
    %336 = memref.load %arg6[%c1_174, %c10_175] : memref<2x16xf32, #tpu.memory_space<smem>>
    %337 = vector.broadcast %336 : f32 to vector<2x128xf32>
    %338 = arith.mulf %337, %331 : vector<2x128xf32>
    %339 = arith.addf %311, %338 : vector<2x128xf32>
    %c0_176 = arith.constant 0 : index
    %c11 = arith.constant 11 : index
    %340 = memref.load %arg4[%c0_176, %c11] : memref<4x16xf32, #tpu.memory_space<smem>>
    %341 = vector.broadcast %340 : f32 to vector<2x128xf32>
    %342 = arith.mulf %341, %12 : vector<2x128xf32>
    %c1_177 = arith.constant 1 : index
    %c11_178 = arith.constant 11 : index
    %343 = memref.load %arg4[%c1_177, %c11_178] : memref<4x16xf32, #tpu.memory_space<smem>>
    %344 = vector.broadcast %343 : f32 to vector<2x128xf32>
    %345 = arith.mulf %344, %13 : vector<2x128xf32>
    %346 = arith.addf %342, %345 : vector<2x128xf32>
    %c2_179 = arith.constant 2 : index
    %c11_180 = arith.constant 11 : index
    %347 = memref.load %arg4[%c2_179, %c11_180] : memref<4x16xf32, #tpu.memory_space<smem>>
    %348 = vector.broadcast %347 : f32 to vector<2x128xf32>
    %349 = arith.mulf %348, %26 : vector<2x128xf32>
    %350 = arith.addf %346, %349 : vector<2x128xf32>
    %c3_181 = arith.constant 3 : index
    %c11_182 = arith.constant 11 : index
    %351 = memref.load %arg4[%c3_181, %c11_182] : memref<4x16xf32, #tpu.memory_space<smem>>
    %352 = vector.broadcast %351 : f32 to vector<2x128xf32>
    %353 = arith.mulf %352, %27 : vector<2x128xf32>
    %354 = arith.addf %350, %353 : vector<2x128xf32>
    %c11_183 = arith.constant 11 : index
    %355 = memref.load %arg5[%c11_183] : memref<16xf32, #tpu.memory_space<smem>>
    %356 = vector.broadcast %355 : f32 to vector<2x128xf32>
    %357 = arith.addf %354, %356 : vector<2x128xf32>
    %cst_184 = arith.constant 0.000000e+00 : f32
    %358 = vector.broadcast %cst_184 : f32 to vector<2x128xf32>
    %359 = arith.maximumf %357, %358 : vector<2x128xf32>
    %c0_185 = arith.constant 0 : index
    %c11_186 = arith.constant 11 : index
    %360 = memref.load %arg6[%c0_185, %c11_186] : memref<2x16xf32, #tpu.memory_space<smem>>
    %361 = vector.broadcast %360 : f32 to vector<2x128xf32>
    %362 = arith.mulf %361, %359 : vector<2x128xf32>
    %363 = arith.addf %335, %362 : vector<2x128xf32>
    %c1_187 = arith.constant 1 : index
    %c11_188 = arith.constant 11 : index
    %364 = memref.load %arg6[%c1_187, %c11_188] : memref<2x16xf32, #tpu.memory_space<smem>>
    %365 = vector.broadcast %364 : f32 to vector<2x128xf32>
    %366 = arith.mulf %365, %359 : vector<2x128xf32>
    %367 = arith.addf %339, %366 : vector<2x128xf32>
    %c0_189 = arith.constant 0 : index
    %c12 = arith.constant 12 : index
    %368 = memref.load %arg4[%c0_189, %c12] : memref<4x16xf32, #tpu.memory_space<smem>>
    %369 = vector.broadcast %368 : f32 to vector<2x128xf32>
    %370 = arith.mulf %369, %12 : vector<2x128xf32>
    %c1_190 = arith.constant 1 : index
    %c12_191 = arith.constant 12 : index
    %371 = memref.load %arg4[%c1_190, %c12_191] : memref<4x16xf32, #tpu.memory_space<smem>>
    %372 = vector.broadcast %371 : f32 to vector<2x128xf32>
    %373 = arith.mulf %372, %13 : vector<2x128xf32>
    %374 = arith.addf %370, %373 : vector<2x128xf32>
    %c2_192 = arith.constant 2 : index
    %c12_193 = arith.constant 12 : index
    %375 = memref.load %arg4[%c2_192, %c12_193] : memref<4x16xf32, #tpu.memory_space<smem>>
    %376 = vector.broadcast %375 : f32 to vector<2x128xf32>
    %377 = arith.mulf %376, %26 : vector<2x128xf32>
    %378 = arith.addf %374, %377 : vector<2x128xf32>
    %c3_194 = arith.constant 3 : index
    %c12_195 = arith.constant 12 : index
    %379 = memref.load %arg4[%c3_194, %c12_195] : memref<4x16xf32, #tpu.memory_space<smem>>
    %380 = vector.broadcast %379 : f32 to vector<2x128xf32>
    %381 = arith.mulf %380, %27 : vector<2x128xf32>
    %382 = arith.addf %378, %381 : vector<2x128xf32>
    %c12_196 = arith.constant 12 : index
    %383 = memref.load %arg5[%c12_196] : memref<16xf32, #tpu.memory_space<smem>>
    %384 = vector.broadcast %383 : f32 to vector<2x128xf32>
    %385 = arith.addf %382, %384 : vector<2x128xf32>
    %cst_197 = arith.constant 0.000000e+00 : f32
    %386 = vector.broadcast %cst_197 : f32 to vector<2x128xf32>
    %387 = arith.maximumf %385, %386 : vector<2x128xf32>
    %c0_198 = arith.constant 0 : index
    %c12_199 = arith.constant 12 : index
    %388 = memref.load %arg6[%c0_198, %c12_199] : memref<2x16xf32, #tpu.memory_space<smem>>
    %389 = vector.broadcast %388 : f32 to vector<2x128xf32>
    %390 = arith.mulf %389, %387 : vector<2x128xf32>
    %391 = arith.addf %363, %390 : vector<2x128xf32>
    %c1_200 = arith.constant 1 : index
    %c12_201 = arith.constant 12 : index
    %392 = memref.load %arg6[%c1_200, %c12_201] : memref<2x16xf32, #tpu.memory_space<smem>>
    %393 = vector.broadcast %392 : f32 to vector<2x128xf32>
    %394 = arith.mulf %393, %387 : vector<2x128xf32>
    %395 = arith.addf %367, %394 : vector<2x128xf32>
    %c0_202 = arith.constant 0 : index
    %c13 = arith.constant 13 : index
    %396 = memref.load %arg4[%c0_202, %c13] : memref<4x16xf32, #tpu.memory_space<smem>>
    %397 = vector.broadcast %396 : f32 to vector<2x128xf32>
    %398 = arith.mulf %397, %12 : vector<2x128xf32>
    %c1_203 = arith.constant 1 : index
    %c13_204 = arith.constant 13 : index
    %399 = memref.load %arg4[%c1_203, %c13_204] : memref<4x16xf32, #tpu.memory_space<smem>>
    %400 = vector.broadcast %399 : f32 to vector<2x128xf32>
    %401 = arith.mulf %400, %13 : vector<2x128xf32>
    %402 = arith.addf %398, %401 : vector<2x128xf32>
    %c2_205 = arith.constant 2 : index
    %c13_206 = arith.constant 13 : index
    %403 = memref.load %arg4[%c2_205, %c13_206] : memref<4x16xf32, #tpu.memory_space<smem>>
    %404 = vector.broadcast %403 : f32 to vector<2x128xf32>
    %405 = arith.mulf %404, %26 : vector<2x128xf32>
    %406 = arith.addf %402, %405 : vector<2x128xf32>
    %c3_207 = arith.constant 3 : index
    %c13_208 = arith.constant 13 : index
    %407 = memref.load %arg4[%c3_207, %c13_208] : memref<4x16xf32, #tpu.memory_space<smem>>
    %408 = vector.broadcast %407 : f32 to vector<2x128xf32>
    %409 = arith.mulf %408, %27 : vector<2x128xf32>
    %410 = arith.addf %406, %409 : vector<2x128xf32>
    %c13_209 = arith.constant 13 : index
    %411 = memref.load %arg5[%c13_209] : memref<16xf32, #tpu.memory_space<smem>>
    %412 = vector.broadcast %411 : f32 to vector<2x128xf32>
    %413 = arith.addf %410, %412 : vector<2x128xf32>
    %cst_210 = arith.constant 0.000000e+00 : f32
    %414 = vector.broadcast %cst_210 : f32 to vector<2x128xf32>
    %415 = arith.maximumf %413, %414 : vector<2x128xf32>
    %c0_211 = arith.constant 0 : index
    %c13_212 = arith.constant 13 : index
    %416 = memref.load %arg6[%c0_211, %c13_212] : memref<2x16xf32, #tpu.memory_space<smem>>
    %417 = vector.broadcast %416 : f32 to vector<2x128xf32>
    %418 = arith.mulf %417, %415 : vector<2x128xf32>
    %419 = arith.addf %391, %418 : vector<2x128xf32>
    %c1_213 = arith.constant 1 : index
    %c13_214 = arith.constant 13 : index
    %420 = memref.load %arg6[%c1_213, %c13_214] : memref<2x16xf32, #tpu.memory_space<smem>>
    %421 = vector.broadcast %420 : f32 to vector<2x128xf32>
    %422 = arith.mulf %421, %415 : vector<2x128xf32>
    %423 = arith.addf %395, %422 : vector<2x128xf32>
    %c0_215 = arith.constant 0 : index
    %c14 = arith.constant 14 : index
    %424 = memref.load %arg4[%c0_215, %c14] : memref<4x16xf32, #tpu.memory_space<smem>>
    %425 = vector.broadcast %424 : f32 to vector<2x128xf32>
    %426 = arith.mulf %425, %12 : vector<2x128xf32>
    %c1_216 = arith.constant 1 : index
    %c14_217 = arith.constant 14 : index
    %427 = memref.load %arg4[%c1_216, %c14_217] : memref<4x16xf32, #tpu.memory_space<smem>>
    %428 = vector.broadcast %427 : f32 to vector<2x128xf32>
    %429 = arith.mulf %428, %13 : vector<2x128xf32>
    %430 = arith.addf %426, %429 : vector<2x128xf32>
    %c2_218 = arith.constant 2 : index
    %c14_219 = arith.constant 14 : index
    %431 = memref.load %arg4[%c2_218, %c14_219] : memref<4x16xf32, #tpu.memory_space<smem>>
    %432 = vector.broadcast %431 : f32 to vector<2x128xf32>
    %433 = arith.mulf %432, %26 : vector<2x128xf32>
    %434 = arith.addf %430, %433 : vector<2x128xf32>
    %c3_220 = arith.constant 3 : index
    %c14_221 = arith.constant 14 : index
    %435 = memref.load %arg4[%c3_220, %c14_221] : memref<4x16xf32, #tpu.memory_space<smem>>
    %436 = vector.broadcast %435 : f32 to vector<2x128xf32>
    %437 = arith.mulf %436, %27 : vector<2x128xf32>
    %438 = arith.addf %434, %437 : vector<2x128xf32>
    %c14_222 = arith.constant 14 : index
    %439 = memref.load %arg5[%c14_222] : memref<16xf32, #tpu.memory_space<smem>>
    %440 = vector.broadcast %439 : f32 to vector<2x128xf32>
    %441 = arith.addf %438, %440 : vector<2x128xf32>
    %cst_223 = arith.constant 0.000000e+00 : f32
    %442 = vector.broadcast %cst_223 : f32 to vector<2x128xf32>
    %443 = arith.maximumf %441, %442 : vector<2x128xf32>
    %c0_224 = arith.constant 0 : index
    %c14_225 = arith.constant 14 : index
    %444 = memref.load %arg6[%c0_224, %c14_225] : memref<2x16xf32, #tpu.memory_space<smem>>
    %445 = vector.broadcast %444 : f32 to vector<2x128xf32>
    %446 = arith.mulf %445, %443 : vector<2x128xf32>
    %447 = arith.addf %419, %446 : vector<2x128xf32>
    %c1_226 = arith.constant 1 : index
    %c14_227 = arith.constant 14 : index
    %448 = memref.load %arg6[%c1_226, %c14_227] : memref<2x16xf32, #tpu.memory_space<smem>>
    %449 = vector.broadcast %448 : f32 to vector<2x128xf32>
    %450 = arith.mulf %449, %443 : vector<2x128xf32>
    %451 = arith.addf %423, %450 : vector<2x128xf32>
    %c0_228 = arith.constant 0 : index
    %c15 = arith.constant 15 : index
    %452 = memref.load %arg4[%c0_228, %c15] : memref<4x16xf32, #tpu.memory_space<smem>>
    %453 = vector.broadcast %452 : f32 to vector<2x128xf32>
    %454 = arith.mulf %453, %12 : vector<2x128xf32>
    %c1_229 = arith.constant 1 : index
    %c15_230 = arith.constant 15 : index
    %455 = memref.load %arg4[%c1_229, %c15_230] : memref<4x16xf32, #tpu.memory_space<smem>>
    %456 = vector.broadcast %455 : f32 to vector<2x128xf32>
    %457 = arith.mulf %456, %13 : vector<2x128xf32>
    %458 = arith.addf %454, %457 : vector<2x128xf32>
    %c2_231 = arith.constant 2 : index
    %c15_232 = arith.constant 15 : index
    %459 = memref.load %arg4[%c2_231, %c15_232] : memref<4x16xf32, #tpu.memory_space<smem>>
    %460 = vector.broadcast %459 : f32 to vector<2x128xf32>
    %461 = arith.mulf %460, %26 : vector<2x128xf32>
    %462 = arith.addf %458, %461 : vector<2x128xf32>
    %c3_233 = arith.constant 3 : index
    %c15_234 = arith.constant 15 : index
    %463 = memref.load %arg4[%c3_233, %c15_234] : memref<4x16xf32, #tpu.memory_space<smem>>
    %464 = vector.broadcast %463 : f32 to vector<2x128xf32>
    %465 = arith.mulf %464, %27 : vector<2x128xf32>
    %466 = arith.addf %462, %465 : vector<2x128xf32>
    %c15_235 = arith.constant 15 : index
    %467 = memref.load %arg5[%c15_235] : memref<16xf32, #tpu.memory_space<smem>>
    %468 = vector.broadcast %467 : f32 to vector<2x128xf32>
    %469 = arith.addf %466, %468 : vector<2x128xf32>
    %cst_236 = arith.constant 0.000000e+00 : f32
    %470 = vector.broadcast %cst_236 : f32 to vector<2x128xf32>
    %471 = arith.maximumf %469, %470 : vector<2x128xf32>
    %c0_237 = arith.constant 0 : index
    %c15_238 = arith.constant 15 : index
    %472 = memref.load %arg6[%c0_237, %c15_238] : memref<2x16xf32, #tpu.memory_space<smem>>
    %473 = vector.broadcast %472 : f32 to vector<2x128xf32>
    %474 = arith.mulf %473, %471 : vector<2x128xf32>
    %475 = arith.addf %447, %474 : vector<2x128xf32>
    %c1_239 = arith.constant 1 : index
    %c15_240 = arith.constant 15 : index
    %476 = memref.load %arg6[%c1_239, %c15_240] : memref<2x16xf32, #tpu.memory_space<smem>>
    %477 = vector.broadcast %476 : f32 to vector<2x128xf32>
    %478 = arith.mulf %477, %471 : vector<2x128xf32>
    %479 = arith.addf %451, %478 : vector<2x128xf32>
    %cst_241 = arith.constant 0.000000e+00 : f32
    %480 = vector.broadcast %cst_241 : f32 to vector<2x128xf32>
    %481 = arith.subf %480, %475 : vector<2x128xf32>
    %482 = math.exp %481 : vector<2x128xf32>
    %cst_242 = arith.constant 1.000000e+00 : f32
    %483 = vector.broadcast %cst_242 : f32 to vector<2x128xf32>
    %484 = arith.addf %483, %482 : vector<2x128xf32>
    %485 = tpu.reciprocal %484 {approx = true} : vector<2x128xf32> -> vector<2x128xf32>
    %c0_243 = arith.constant 0 : index
    %c0_244 = arith.constant 0 : index
    %c0_245 = arith.constant 0 : index
    %c0_246 = arith.constant 0 : index
    %486 = vector.load %arg8[%c0_243, %c0_244, %c0_245, %c0_246] : memref<1x2x2x128xf32, #tpu.memory_space<vmem>>, vector<1x1x2x128xf32>
    %487 = vector.shape_cast %486 : vector<1x1x2x128xf32> to vector<2x128xf32>
    %488 = vector.shape_cast %485 : vector<2x128xf32> to vector<1x1x2x128xf32>
    tpu.vector_store %arg8[%c0_243, %c0_244, %c0_245, %c0_246], %488 {strides = array<i32>} : memref<1x2x2x128xf32, #tpu.memory_space<vmem>>, vector<1x1x2x128xf32>,
    %cst_247 = arith.constant 0.000000e+00 : f32
    %489 = vector.broadcast %cst_247 : f32 to vector<2x128xf32>
    %490 = arith.subf %489, %479 : vector<2x128xf32>
    %491 = math.exp %490 : vector<2x128xf32>
    %cst_248 = arith.constant 1.000000e+00 : f32
    %492 = vector.broadcast %cst_248 : f32 to vector<2x128xf32>
    %493 = arith.addf %492, %491 : vector<2x128xf32>
    %494 = tpu.reciprocal %493 {approx = true} : vector<2x128xf32> -> vector<2x128xf32>
    %c0_249 = arith.constant 0 : index
    %c1_250 = arith.constant 1 : index
    %c0_251 = arith.constant 0 : index
    %c0_252 = arith.constant 0 : index
    %495 = vector.load %arg8[%c0_249, %c1_250, %c0_251, %c0_252] : memref<1x2x2x128xf32, #tpu.memory_space<vmem>>, vector<1x1x2x128xf32>
    %496 = vector.shape_cast %495 : vector<1x1x2x128xf32> to vector<2x128xf32>
    %497 = vector.shape_cast %494 : vector<2x128xf32> to vector<1x1x2x128xf32>
    tpu.vector_store %arg8[%c0_249, %c1_250, %c0_251, %c0_252], %497 {strides = array<i32>} : memref<1x2x2x128xf32, #tpu.memory_space<vmem>>, vector<1x1x2x128xf32>,
    return
  }
  func.func @transform_0(%arg0: i32, %arg1: i32) -> (i32, i32, i32, i32) {
    %c0_i32 = arith.constant 0 : i32
    %c0_i32_0 = arith.constant 0 : i32
    %c0_i32_1 = arith.constant 0 : i32
    return %arg0, %c0_i32, %arg1, %c0_i32_0 : i32, i32, i32, i32
  }
  func.func @transform_1(%arg0: i32, %arg1: i32) -> (i32, i32, i32, i32) {
    %c0_i32 = arith.constant 0 : i32
    %c0_i32_0 = arith.constant 0 : i32
    %c0_i32_1 = arith.constant 0 : i32
    return %arg0, %c0_i32, %arg1, %c0_i32_0 : i32, i32, i32, i32
  }
  func.func @transform_2(%arg0: i32, %arg1: i32) -> (i32, i32) {
    %c0_i32 = arith.constant 0 : i32
    %c0_i32_0 = arith.constant 0 : i32
    %c0_i32_1 = arith.constant 0 : i32
    return %c0_i32, %c0_i32_0 : i32, i32
  }
  func.func @transform_3(%arg0: i32, %arg1: i32) -> i32 {
    %c0_i32 = arith.constant 0 : i32
    %c0_i32_0 = arith.constant 0 : i32
    return %c0_i32 : i32
  }
  func.func @transform_4(%arg0: i32, %arg1: i32) -> (i32, i32) {
    %c0_i32 = arith.constant 0 : i32
    %c0_i32_0 = arith.constant 0 : i32
    %c0_i32_1 = arith.constant 0 : i32
    return %c0_i32, %c0_i32_0 : i32, i32
  }
  func.func @transform_5(%arg0: i32, %arg1: i32) -> i32 {
    %c0_i32 = arith.constant 0 : i32
    %c0_i32_0 = arith.constant 0 : i32
    return %c0_i32 : i32
  }
  func.func @transform_6(%arg0: i32, %arg1: i32) -> (i32, i32, i32, i32) {
    %c0_i32 = arith.constant 0 : i32
    %c0_i32_0 = arith.constant 0 : i32
    %c0_i32_1 = arith.constant 0 : i32
    return %arg0, %c0_i32, %arg1, %c0_i32_0 : i32, i32, i32, i32
  }
}

</mosaic_0001>

<bundles_post_ra>
// kernel: sam_forward.1
= control target key start
LH: loop header
LB: loop body
LE: loop exit
PB: predicated region body
PF: predicated region fallthrough
CT: control target
= control target key end

     0   :  { %11 = vsyncpa [#allocation3], 0  ;;  %s1848_s0 = inlined_call_operand.vmem [shape: f32[2,4,2,128], index: 0, kind: input, shape index: {}]   ;;  %s1849_s1 = inlined_call_operand.vmem [shape: f32[2,4,2,128], index: 1, kind: input, shape index: {}]   ;;  %s1850_s2 = inlined_call_operand.vmem [shape: f32[4,16], index: 2, kind: input, shape index: {}]   ;;  %s1851_s3 = inlined_call_operand.vmem [shape: f32[16], index: 3, kind: input, shape index: {}]   ;;  %s1852_s4 = inlined_call_operand.vmem [shape: f32[2,16], index: 4, kind: input, shape index: {}]   ;;  %s1853_s5 = inlined_call_operand.vmem [shape: f32[2], index: 5, kind: input, shape index: {}]   ;;  %s1854_s6 = inlined_call_operand.vmem [shape: f32[2,2,2,128], index: 6, kind: output, shape index: {}]  }
   0x1   :  { %12 = vsyncpa [#allocation5], 0 }
   0x2   :  { %13 = vsyncpa [#allocation8], 0  ;;  %s1333_s21 = smov 0   ;;  %s1335_s22 = smov 0  }
   0x3   :  { %s1337_s23 = smov 0  }
   0x4 LB: > { %s228_s26 = sshll.u32 %s1851_s3, 4  ;;  %s984_s27 = sadd.s32 4294967295, %s1292_s23   ;;  %s1292_s23 = sphi %s1337_s23, %s19_s23   ;;  %s1288_s22 = sphi %s1335_s22, %s1865_s22   ;;  %s1284_s21 = sphi %s1333_s21, %s1864_s21   ;;  %s229_s26 = int_to_ptr.vmem [resolvable:$true] %s228_s26 }
   0x5   : > { %p986_p0 = scmp.ge.s32.totalorder %s1292_s23, 1  ;;  %p204_p1 = scmp.lt.s32.totalorder %s1292_s23, 3 }
   0x6   : > { %p1354_p2 = scmp.eq.s32.totalorder %s984_s27, 0  ;;  %s31_s30 = sadd.s32 1, %s1288_s22 }
   0x7   : > { %p1358_p3 = pnand %p986_p0, %p204_p1  ;;  %s217_s9 = sshll.u32 %s1850_s2, 4  ;;  %s218_s9 = int_to_ptr.vmem [resolvable:$true] %s217_s9 }
   0x8   : > { %s1858_s28 = scalar_select %p1354_p2, 1, 0 }
   0x9   : > { %s1859_s29 = scalar_select %p1358_p3, 1, 0 }
   0xa   : > { %p1141_p4 = pneg %p1358_p3  ;;  %p1374_p6 = scmp.ge.s32.totalorder %s31_s30, 2 }
   0xb   : > { %s239_s14 = sshll.u32 %s1852_s4, 4  ;;  %s1198_s15 = scalar_lea.vmem %s229_s26, 16  ;;  %s240_s14 = int_to_ptr.vmem [resolvable:$true] %s239_s14 }
   0xc   : > { %p1370_p5 = pnand %p1354_p2, %p1141_p4  ;;  %p1199_p7 = scmp.ne.s32.totalorder %s229_s26, %s1198_s15 }
   0xd   : > { %p1206_p11 = scmp.lt.s32.totalorder %s229_s26, %s229_s26  ;;  %p1207_p12 = scmp.lt.s32.totalorder %s1198_s15, %s1198_s15 }
   0xe   : > { %p1200_p8 = pneg %p1370_p5 }
   0xf   : > { %p1208_p13 = por %p1207_p12, %p1206_p11 }
  0x10   : > { %p1201_p9 = pnand %p1200_p8, %p1199_p7 }
  0x12   : > { %p1202_p10 = pneg %p1201_p9 }
  0x14   : > { %p1209_p0 = pnand %p1208_p13, %p1202_p10 }
  0x16   : > { %1212 = shalt.err (!%p1209_p0)
}
  0x17   : > { %s1294_s16 = smov [#allocation4]   ;;  %s1867_s30 = smov (%p1374_p6, %s31_s30), 0 }
  0x18   : > { %1147 = dma.vmem_to_smem (!%p1370_p5), %s229_s26, 16, %s1294_s16, [#allocation5]  }
  0x19   : > { %s1213_s17 = scalar_lea.vmem %s218_s9, 64  ;;  %p1221_p9 = scmp.lt.s32.totalorder %s218_s9, %s218_s9 }
  0x1a   : > { %p1214_p1 = scmp.ne.s32.totalorder %s218_s9, %s1213_s17  ;;  %p1222_p2 = scmp.lt.s32.totalorder %s1213_s17, %s1213_s17 }
  0x1c   : > { %p1216_p4 = pnand %p1214_p1, %p1200_p8  ;;  %p1223_p11 = por %p1222_p2, %p1221_p9 }
  0x1e   : > { %p1217_p7 = pneg %p1216_p4 }
  0x20   : > { %p1224_p10 = pnand %p1223_p11, %p1217_p7 }
  0x22   : > { %1227 = shalt.err (!%p1224_p10)
}
  0x23   : > { %s1295_s18 = smov [#allocation2]   ;;  %s1228_s19 = scalar_lea.vmem %s240_s14, 32 }
  0x24   : > { %1144 = dma.vmem_to_smem (!%p1370_p5), %s218_s9, 64, %s1295_s18, [#allocation3]  }
  0x25   : > { %p1229_p6 = scmp.ne.s32.totalorder %s240_s14, %s1228_s19  ;;  %p1236_p0 = scmp.lt.s32.totalorder %s240_s14, %s240_s14 }
  0x26   : > { %p1237_p1 = scmp.lt.s32.totalorder %s1228_s19, %s1228_s19 }
  0x27   : > { %p1231_p12 = pnand %p1229_p6, %p1200_p8 }
  0x28   : > { %p1238_p4 = por %p1237_p1, %p1236_p0 }
  0x29   : > { %p1232_p13 = pneg %p1231_p12 }
  0x2b   : > { %p1239_p3 = pnand %p1238_p4, %p1232_p13 }
  0x2d   : > { %1242 = shalt.err (!%p1239_p3)
}
  0x2e   : > { %s1296_s20 = smov [#allocation6]   ;;  %s250_s26 = sshll.u32 %s1853_s5, 4  ;;  %s251_s26 = int_to_ptr.vmem [resolvable:$true] %s250_s26 }
  0x2f   : > { %1150 = dma.vmem_to_smem (!%p1370_p5), %s240_s14, 32, %s1296_s20, [#allocation5]  }
  0x30   : > { %s1243_s27 = scalar_lea.vmem %s251_s26, 16  ;;  %p1251_p11 = scmp.lt.s32.totalorder %s251_s26, %s251_s26 }
  0x31   : > { %p1244_p2 = scmp.ne.s32.totalorder %s251_s26, %s1243_s27  ;;  %p1252_p10 = scmp.lt.s32.totalorder %s1243_s27, %s1243_s27 }
  0x33   : > { %p1246_p7 = pnand %p1244_p2, %p1200_p8  ;;  %p1253_p6 = por %p1252_p10, %p1251_p11 }
  0x35   : > { %p1247_p9 = pneg %p1246_p7 }
  0x37   : > { %p1254_p3 = pnand %p1253_p6, %p1247_p9 }
  0x39   : > { %1257 = shalt.err (!%p1254_p3)
}
  0x3a   : > { %s1297_s7 = smov [#allocation7]   ;;  %p1862_p12 = scmp.ne.s32.totalorder %s1859_s29, 0 }
  0x3b   : > { %1153 = dma.vmem_to_smem (!%p1370_p5), %s251_s26, 16, %s1297_s7, [#allocation8]  }
  0x3c   : > { %285 = sbr.rel (%p1862_p12) target bundleno = 204 (0xcc), region = 44  ;;  %p1863_p13 = scmp.ne.s32.totalorder (!%p1862_p12), %s1858_s28, 0 }
  0x43   : > { %1271 = dma.done.wait (%p1863_p13), [#allocation3], 64  }
  0x44   : > { %1273 = vsyncadd (%p1863_p13), [#allocation3], 4294967232 }
  0x45   : > { %1275 = dma.done.wait (%p1863_p13), [#allocation5], 48  }
  0x46   : > { %1277 = vsyncadd (%p1863_p13), [#allocation5], 4294967248 }
  0x47   : > { %1279 = dma.done.wait (%p1863_p13), [#allocation8], 16  }
  0x48   : > { %1281 = vsyncadd (%p1863_p13), [#allocation8], 4294967280 }
  0x49   : > { %303 = sfence }
  0x4a   : > { %p342_p5 = scmp.lt.s32.totalorder %s1284_s21, 1  ;;  %s1425_s29 = sld [smem:[#allocation2]] }
  0x4b   : > { %s1430_s8 = sld [smem:[#allocation2 + $0x80]]  ;;  %s1443_s17 = sld [smem:[#allocation7 + $0x1]] }
  0x4c   : > { %s1869_s21 = smov (!%p342_p5, %s1284_s21), 1  ;;  %s1432_s9 = sld [smem:[#allocation2 + $0x100]] }
  0x4d   : > { %s1122_s10 = sshll.u32 %s1869_s21, 3  ;;  %s1435_s11 = sld [smem:[#allocation7]] }
  0x4e   : > { %s349_s28 = scalar_lea.vmem %s1848_s0, %s1122_s10  ;;  %s357_s16 = scalar_lea.vmem %s1849_s1, %s1122_s10 }
  0x4f   : > { %v366_v0 = vld [vmem:[%s349_s28] sm:$0x3]  ;;  %v1003_v1 = vld [vmem:[%s349_s28 + $0x2] sm:$0x3]  ;;  %v1004_v2 = vld [vmem:[%s349_s28 + $0x4] sm:$0x3] }
  0x50   : > { %v369_v3 = vadd.f32 %v1003_v1, %v366_v0  ;;  %v370_v4 = vmax.f32 %v366_v0, %v1003_v1  ;;  %v379_v5 = vld [vmem:[%s357_s16] sm:$0x3]  ;;  %v1006_v6 = vld [vmem:[%s357_s16 + $0x2] sm:$0x3]  ;;  %v1005_v7 = vld [vmem:[%s349_s28 + $0x6] sm:$0x3]  ;;  %v397_v16 = vstv %s1425_s29 }
  0x51   : > { %v382_v8 = vadd.f32 %v1006_v6, %v379_v5  ;;  %v383_v9 = vmax.f32 %v379_v5, %v1006_v6  ;;  %v1007_v10 = vld [vmem:[%s357_s16 + $0x4] sm:$0x3]  ;;  %s1012_s18 = sld [smem:[#allocation2 + $0x180]]  ;;  %v1008_v13 = vld [vmem:[%s357_s16 + $0x6] sm:$0x3]  ;;  %v400_v17 = vstv %s1430_s8  ;;  %s1014_s25 = sld [smem:[#allocation2 + $0x1]]  ;;  %v395_v30 = vstv %s1443_s17 }
  0x52   : > { %v373_v11 = vadd.f32 %v1004_v2, %v369_v3  ;;  %v374_v12 = vmax.f32 %v370_v4, %v1004_v2  ;;  %s1445_s19 = sld [smem:[#allocation4]]  ;;  %v404_v20 = vstv %s1432_s9  ;;  %s1015_s26 = sld [smem:[#allocation2 + $0x81]] }
  0x53   : > { %s1447_s20 = sld [smem:[#allocation6]]  ;;  %v386_v14 = vadd.f32 %v1007_v10, %v382_v8  ;;  %v387_v15 = vmax.f32 %v383_v9, %v1007_v10  ;;  %s1016_s27 = sld [smem:[#allocation2 + $0x101]]  ;;  %v393_v29 = vstv %s1435_s11 }
  0x54   : > { %s1451_s24 = sld [smem:[#allocation6 + $0x80]]  ;;  %v1453_v18 = vadd.f32 %v1005_v7, %v373_v11  ;;  %v1455_v19 = vmax.f32 %v374_v12, %v1005_v7  ;;  %s1462_s7 = sld [smem:[#allocation2 + $0x181]] }
  0x55   : > { %v1458_v21 = vadd.f32 %v1008_v13, %v386_v14  ;;  %v1460_v22 = vmax.f32 %v387_v15, %v1008_v13  ;;  %s1464_s29 = sld [smem:[#allocation4 + $0x1]]  ;;  %s1473_s9 = sld [smem:[#allocation2 + $0x2]] }
  0x56   : > { %v398_v23 = vmul.f32 %v397_v16, %v1453_v18  ;;  %v401_v24 = vmul.f32 %v400_v17, %v1455_v19  ;;  %s1468_s8 = sld [smem:[#allocation6 + $0x1]]  ;;  %s1475_s12 = sld [smem:[#allocation2 + $0x82]] }
  0x57   : > { %s1470_s10 = sld [smem:[#allocation6 + $0x81]]  ;;  %v405_v25 = vmul.f32 %v404_v20, %v1458_v21  ;;  %v408_v26 = vstv %s1012_s18  ;;  %s1478_s13 = sld [smem:[#allocation2 + $0x102]]  ;;  %v424_v31 = vstv %s1014_s25 }
  0x58   : > { %v402_v27 = vadd.f32 %v401_v24, %v398_v23  ;;  %v409_v28 = vmul.f32 %v408_v26, %v1460_v22  ;;  %s1480_s28 = sld [smem:[#allocation2 + $0x182]]  ;;  %v425_v33 = vmul.f32 %v424_v31, %v1453_v18  ;;  %v427_v34 = vstv %s1015_s26  ;;  %s1489_s16 = sld [smem:[#allocation2 + $0x3]] }
  0x59   : > { %s1484_s14 = sld [smem:[#allocation4 + $0x2]]  ;;  %v431_v35 = vstv %s1016_s27  ;;  %v412_v36 = vstv %s1445_s19  ;;  %v428_v37 = vmul.f32 %v427_v34, %v1455_v19  ;;  %s1495_s18 = sld [smem:[#allocation2 + $0x83]]  ;;  %v416_v41 = vstv %s1447_s20 }
  0x5a   : > { %v406_v32 = vadd.f32 %v405_v25, %v402_v27  ;;  %s1487_s15 = sld [smem:[#allocation6 + $0x2]]  ;;  %v432_v38 = vmul.f32 %v431_v35, %v1458_v21  ;;  %v435_v39 = vstv %s1462_s7  ;;  %s1497_s25 = sld [smem:[#allocation2 + $0x103]]  ;;  %v420_v42 = vstv %s1451_s24 }
  0x5b   : > { %v439_v43 = vstv %s1464_s29  ;;  %s1502_s26 = sld [smem:[#allocation6 + $0x82]]  ;;  %s1504_s27 = sld [smem:[#allocation2 + $0x183]]  ;;  %v429_v44 = vadd.f32 %v428_v37, %v425_v33  ;;  %v436_v45 = vmul.f32 %v435_v39, %v1460_v22  ;;  %v451_v46 = vstv %s1473_s9 }
  0x5c   : > { %v410_v40 = vadd.f32 %v409_v28, %v406_v32  ;;  %v454_v47 = vstv %s1475_s12  ;;  %v452_v49 = vmul.f32 %v451_v46, %v1453_v18  ;;  %s1512_s19 = sld [smem:[#allocation4 + $0x3]]  ;;  %s1514_s20 = sld [smem:[#allocation2 + $0x4]]  ;;  %v443_v53 = vstv %s1468_s8 }
  0x5d   : > { %v455_v50 = vmul.f32 %v454_v47, %v1455_v19  ;;  %v458_v51 = vstv %s1478_s13  ;;  %v433_v52 = vadd.f32 %v432_v38, %v429_v44  ;;  %s1519_s24 = sld [smem:[#allocation2 + $0x84]]  ;;  %v447_v57 = vstv %s1470_s10  ;;  %s1534_s8 = sld [smem:[#allocation6 + $0x3]] }
  0x5e   : > { %v413_v48 = vadd.f32 %v412_v36, %v410_v40  ;;  %v459_v54 = vmul.f32 %v458_v51, %v1458_v21  ;;  %v462_v55 = vstv %s1480_s28  ;;  %s1523_s7 = sld [smem:[#allocation2 + $0x104]]  ;;  %v478_v62 = vstv %s1489_s16  ;;  %s1536_s10 = sld [smem:[#allocation6 + $0x83]] }
  0x5f   : > { %v456_v58 = vadd.f32 %v455_v50, %v452_v49  ;;  %v463_v59 = vmul.f32 %v462_v55, %v1460_v22  ;;  %s1525_s29 = sld [smem:[#allocation2 + $0x184]]  ;;  %v437_v60 = vadd.f32 %v436_v45, %v433_v52  ;;  %v466_v61 = vstv %s1484_s14  ;;  %s1543_s12 = sld [smem:[#allocation2 + $0x5]] }
  0x60   : > { %v414_v56 = vmax.f32 %v413_v48, 0.0  ;;  %v481_v63 = vstv %s1495_s18  ;;  %v479_v3 = vmul.f32 %v478_v62, %v1453_v18  ;;  %v485_v6 = vstv %s1497_s25  ;;  %s1541_s9 = sld [smem:[#allocation4 + $0x4]]  ;;  %s1550_s28 = sld [smem:[#allocation2 + $0x85]] }
  0x61   : > { %v460_v2 = vadd.f32 %v459_v54, %v456_v58  ;;  %v440_v4 = vadd.f32 %v439_v43, %v437_v60  ;;  %v482_v5 = vmul.f32 %v481_v63, %v1455_v19  ;;  %v489_v7 = vstv %s1504_s27  ;;  %s1548_s13 = sld [smem:[#allocation6 + $0x4]]  ;;  %s1556_s14 = sld [smem:[#allocation2 + $0x105]] }
  0x62   : > { %v417_v0 = vmul.f32 %v416_v41, %v414_v56  ;;  %v421_v1 = vmul.f32 %v420_v42, %v414_v56  ;;  %v470_v9 = vstv %s1487_s15  ;;  %v474_v10 = vstv %s1502_s26  ;;  %s1558_s11 = sld [smem:[#allocation2 + $0x185]]  ;;  %s1564_s15 = sld [smem:[#allocation6 + $0x84]] }
  0x63   : > { %v464_v8 = vadd.f32 %v463_v59, %v460_v2  ;;  %v486_v11 = vmul.f32 %v485_v6, %v1458_v21  ;;  %v441_v13 = vmax.f32 %v440_v4, 0.0  ;;  %v483_v14 = vadd.f32 %v482_v5, %v479_v3  ;;  %s1567_s17 = sld [smem:[#allocation4 + $0x5]]  ;;  %s1569_s16 = sld [smem:[#allocation2 + $0x6]] }
  0x64   : > { %v418_v12 = vadd.f32 %v417_v0, %v393_v29  ;;  %v490_v15 = vmul.f32 %v489_v7, %v1460_v22  ;;  %v422_v16 = vadd.f32 %v421_v1, %v395_v30  ;;  %v493_v20 = vstv %s1512_s19  ;;  %s1572_s18 = sld [smem:[#allocation2 + $0x86]]  ;;  %s1583_s27 = sld [smem:[#allocation6 + $0x5]] }
  0x65   : > { %v467_v17 = vadd.f32 %v466_v61, %v464_v8  ;;  %v505_v23 = vstv %s1514_s20  ;;  %v444_v24 = vmul.f32 %v443_v53, %v441_v13  ;;  %v448_v25 = vmul.f32 %v447_v57, %v441_v13  ;;  %s1574_s25 = sld [smem:[#allocation2 + $0x106]]  ;;  %s1587_s19 = sld [smem:[#allocation2 + $0x7]] }
  0x66   : > { %v487_v26 = vadd.f32 %v486_v11, %v483_v14  ;;  %v506_v27 = vmul.f32 %v505_v23, %v1453_v18  ;;  %v508_v29 = vstv %s1519_s24  ;;  %v512_v31 = vstv %s1523_s7  ;;  %s1577_s26 = sld [smem:[#allocation2 + $0x186]]  ;;  %s1593_s20 = sld [smem:[#allocation2 + $0x87]] }
  0x67   : > { %v468_v28 = vmax.f32 %v467_v17, 0.0  ;;  %v516_v32 = vstv %s1525_s29  ;;  %v509_v33 = vmul.f32 %v508_v29, %v1455_v19  ;;  %v445_v34 = vadd.f32 %v444_v24, %v418_v12  ;;  %s1595_s24 = sld [smem:[#allocation2 + $0x107]]  ;;  %s1598_s7 = sld [smem:[#allocation6 + $0x85]] }
  0x68   : > { %v491_v30 = vadd.f32 %v490_v15, %v487_v26  ;;  %v449_v35 = vadd.f32 %v448_v25, %v422_v16  ;;  %v513_v37 = vmul.f32 %v512_v31, %v1458_v21  ;;  %v517_v41 = vmul.f32 %v516_v32, %v1460_v22  ;;  %s1600_s29 = sld [smem:[#allocation4 + $0x6]] }
  0x69   : > { %v471_v36 = vmul.f32 %v470_v9, %v468_v28  ;;  %v475_v38 = vmul.f32 %v474_v10, %v468_v28  ;;  %v510_v40 = vadd.f32 %v509_v33, %v506_v27  ;;  %v497_v42 = vstv %s1534_s8  ;;  %s1603_s8 = sld [smem:[#allocation2 + $0x187]] }
  0x6a   : > { %v494_v39 = vadd.f32 %v493_v20, %v491_v30  ;;  %v501_v43 = vstv %s1536_s10  ;;  %v520_v44 = vstv %s1541_s9  ;;  %v532_v45 = vstv %s1543_s12  ;;  %s1608_s10 = sld [smem:[#allocation6 + $0x6]]  ;;  %s1613_s9 = sld [smem:[#allocation2 + $0x8]] }
  0x6b   : > { %v514_v47 = vadd.f32 %v513_v37, %v510_v40  ;;  %v533_v48 = vmul.f32 %v532_v45, %v1453_v18  ;;  %v535_v49 = vstv %s1550_s28  ;;  %v524_v50 = vstv %s1548_s13  ;;  %s1618_s12 = sld [smem:[#allocation2 + $0x88]]  ;;  %s1623_s28 = sld [smem:[#allocation6 + $0x86]] }
  0x6c   : > { %v495_v46 = vmax.f32 %v494_v39, 0.0  ;;  %v536_v51 = vmul.f32 %v535_v49, %v1455_v19  ;;  %v539_v52 = vstv %s1556_s14  ;;  %v543_v53 = vstv %s1558_s11  ;;  %s1620_s13 = sld [smem:[#allocation2 + $0x108]]  ;;  %s1625_s14 = sld [smem:[#allocation4 + $0x7]] }
  0x6d   : > { %v472_v54 = vadd.f32 %v471_v36, %v445_v34  ;;  %v476_v55 = vadd.f32 %v475_v38, %v449_v35  ;;  %v518_v56 = vadd.f32 %v517_v41, %v514_v47  ;;  %v540_v57 = vmul.f32 %v539_v52, %v1458_v21  ;;  %s1628_s11 = sld [smem:[#allocation2 + $0x188]] }
  0x6e   : > { %v498_v58 = vmul.f32 %v497_v42, %v495_v46  ;;  %v502_v59 = vmul.f32 %v501_v43, %v495_v46  ;;  %v537_v60 = vadd.f32 %v536_v51, %v533_v48  ;;  %v544_v61 = vmul.f32 %v543_v53, %v1460_v22 }
  0x6f   : > { %v521_v62 = vadd.f32 %v520_v44, %v518_v56  ;;  %v528_v63 = vstv %s1564_s15  ;;  %v547_v0 = vstv %s1567_s17  ;;  %v559_v1 = vstv %s1569_s16  ;;  %s1633_s15 = sld [smem:[#allocation6 + $0x7]]  ;;  %s1638_s17 = sld [smem:[#allocation2 + $0x9]] }
  0x70   : > { %v541_v2 = vadd.f32 %v540_v57, %v537_v60  ;;  %v560_v3 = vmul.f32 %v559_v1, %v1453_v18  ;;  %v562_v4 = vstv %s1572_s18  ;;  %v566_v5 = vstv %s1574_s25  ;;  %s1643_s16 = sld [smem:[#allocation2 + $0x89]]  ;;  %s1648_s25 = sld [smem:[#allocation6 + $0x87]] }
  0x71   : > { %v522_v6 = vmax.f32 %v521_v62, 0.0  ;;  %v563_v7 = vmul.f32 %v562_v4, %v1455_v19  ;;  %v567_v8 = vmul.f32 %v566_v5, %v1458_v21  ;;  %v570_v9 = vstv %s1577_s26  ;;  %s1645_s18 = sld [smem:[#allocation2 + $0x109]]  ;;  %s1650_s26 = sld [smem:[#allocation4 + $0x8]] }
  0x72   : > { %v499_v10 = vadd.f32 %v498_v58, %v472_v54  ;;  %v503_v11 = vadd.f32 %v502_v59, %v476_v55  ;;  %v545_v12 = vadd.f32 %v544_v61, %v541_v2  ;;  %v551_v13 = vstv %s1583_s27  ;;  %s1653_s27 = sld [smem:[#allocation2 + $0x189]] }
  0x73   : > { %v525_v14 = vmul.f32 %v524_v50, %v522_v6  ;;  %v529_v15 = vmul.f32 %v528_v63, %v522_v6  ;;  %v564_v16 = vadd.f32 %v563_v7, %v560_v3  ;;  %v571_v17 = vmul.f32 %v570_v9, %v1460_v22 }
  0x74   : > { %v548_v20 = vadd.f32 %v547_v0, %v545_v12  ;;  %v586_v23 = vstv %s1587_s19  ;;  %v589_v24 = vstv %s1593_s20  ;;  %v593_v25 = vstv %s1595_s24  ;;  %s1658_s19 = sld [smem:[#allocation6 + $0x8]]  ;;  %s1663_s20 = sld [smem:[#allocation2 + $0xa]] }
  0x75   : > { %v555_v26 = vstv %s1598_s7  ;;  %v568_v27 = vadd.f32 %v567_v8, %v564_v16  ;;  %v574_v28 = vstv %s1600_s29  ;;  %v587_v29 = vmul.f32 %v586_v23, %v1453_v18  ;;  %s1668_s24 = sld [smem:[#allocation2 + $0x8a]]  ;;  %s1673_s29 = sld [smem:[#allocation6 + $0x88]] }
  0x76   : > { %v549_v31 = vmax.f32 %v548_v20, 0.0  ;;  %v590_v32 = vmul.f32 %v589_v24, %v1455_v19  ;;  %v594_v30 = vmul.f32 %v593_v25, %v1458_v21  ;;  %v597_v33 = vstv %s1603_s8  ;;  %s1670_s7 = sld [smem:[#allocation2 + $0x10a]]  ;;  %s1675_s8 = sld [smem:[#allocation4 + $0x9]] }
  0x77   : > { %v526_v34 = vadd.f32 %v525_v14, %v499_v10  ;;  %v530_v35 = vadd.f32 %v529_v15, %v503_v11  ;;  %v572_v36 = vadd.f32 %v571_v17, %v568_v27  ;;  %v578_v37 = vstv %s1608_s10  ;;  %s1678_s10 = sld [smem:[#allocation2 + $0x18a]] }
  0x78   : > { %v552_v38 = vmul.f32 %v551_v13, %v549_v31  ;;  %v556_v39 = vmul.f32 %v555_v26, %v549_v31  ;;  %v591_v40 = vadd.f32 %v590_v32, %v587_v29  ;;  %v598_v41 = vmul.f32 %v597_v33, %v1460_v22 }
  0x79   : > { %v575_v42 = vadd.f32 %v574_v28, %v572_v36  ;;  %v613_v43 = vstv %s1613_s9  ;;  %v616_v44 = vstv %s1618_s12  ;;  %v620_v45 = vstv %s1620_s13  ;;  %s1683_s9 = sld [smem:[#allocation6 + $0x9]]  ;;  %s1688_s12 = sld [smem:[#allocation2 + $0xb]] }
  0x7a   : > { %v582_v46 = vstv %s1623_s28  ;;  %v595_v47 = vadd.f32 %v594_v30, %v591_v40  ;;  %v601_v48 = vstv %s1625_s14  ;;  %v614_v49 = vmul.f32 %v613_v43, %v1453_v18  ;;  %s1693_s13 = sld [smem:[#allocation2 + $0x8b]]  ;;  %s1698_s14 = sld [smem:[#allocation6 + $0x89]] }
  0x7b   : > { %v576_v50 = vmax.f32 %v575_v42, 0.0  ;;  %v617_v51 = vmul.f32 %v616_v44, %v1455_v19  ;;  %v621_v52 = vmul.f32 %v620_v45, %v1458_v21  ;;  %v624_v53 = vstv %s1628_s11  ;;  %s1695_s28 = sld [smem:[#allocation2 + $0x10b]]  ;;  %s1700_s11 = sld [smem:[#allocation4 + $0xa]] }
  0x7c   : > { %v553_v54 = vadd.f32 %v552_v38, %v526_v34  ;;  %v557_v55 = vadd.f32 %v556_v39, %v530_v35  ;;  %v599_v56 = vadd.f32 %v598_v41, %v595_v47  ;;  %v605_v57 = vstv %s1633_s15  ;;  %s1703_s15 = sld [smem:[#allocation2 + $0x18b]] }
  0x7d   : > { %v579_v58 = vmul.f32 %v578_v37, %v576_v50  ;;  %v583_v59 = vmul.f32 %v582_v46, %v576_v50  ;;  %v618_v60 = vadd.f32 %v617_v51, %v614_v49  ;;  %v625_v61 = vmul.f32 %v624_v53, %v1460_v22 }
  0x7e   : > { %v602_v62 = vadd.f32 %v601_v48, %v599_v56  ;;  %v640_v63 = vstv %s1638_s17  ;;  %v643_v0 = vstv %s1643_s16  ;;  %v647_v1 = vstv %s1645_s18  ;;  %s1708_s17 = sld [smem:[#allocation6 + $0xa]]  ;;  %s1713_s16 = sld [smem:[#allocation2 + $0xc]] }
  0x7f   : > { %v609_v2 = vstv %s1648_s25  ;;  %v622_v3 = vadd.f32 %v621_v52, %v618_v60  ;;  %v628_v4 = vstv %s1650_s26  ;;  %v641_v5 = vmul.f32 %v640_v63, %v1453_v18  ;;  %s1718_s18 = sld [smem:[#allocation2 + $0x8c]]  ;;  %s1723_s26 = sld [smem:[#allocation6 + $0x8a]] }
  0x80   : > { %v603_v6 = vmax.f32 %v602_v62, 0.0  ;;  %v644_v7 = vmul.f32 %v643_v0, %v1455_v19  ;;  %v648_v8 = vmul.f32 %v647_v1, %v1458_v21  ;;  %v651_v9 = vstv %s1653_s27  ;;  %s1720_s25 = sld [smem:[#allocation2 + $0x10c]]  ;;  %s1725_s27 = sld [smem:[#allocation4 + $0xb]] }
  0x81   : > { %v580_v10 = vadd.f32 %v579_v58, %v553_v54  ;;  %v584_v11 = vadd.f32 %v583_v59, %v557_v55  ;;  %v626_v12 = vadd.f32 %v625_v61, %v622_v3  ;;  %v632_v13 = vstv %s1658_s19  ;;  %s1728_s19 = sld [smem:[#allocation2 + $0x18c]] }
  0x82   : > { %v606_v14 = vmul.f32 %v605_v57, %v603_v6  ;;  %v610_v15 = vmul.f32 %v609_v2, %v603_v6  ;;  %v645_v16 = vadd.f32 %v644_v7, %v641_v5  ;;  %v652_v17 = vmul.f32 %v651_v9, %v1460_v22 }
  0x83   : > { %v629_v20 = vadd.f32 %v628_v4, %v626_v12  ;;  %v667_v23 = vstv %s1663_s20  ;;  %v670_v24 = vstv %s1668_s24  ;;  %v674_v25 = vstv %s1670_s7  ;;  %s1733_s20 = sld [smem:[#allocation6 + $0xb]]  ;;  %s1738_s24 = sld [smem:[#allocation2 + $0xd]] }
  0x84   : > { %v636_v26 = vstv %s1673_s29  ;;  %v649_v27 = vadd.f32 %v648_v8, %v645_v16  ;;  %v655_v28 = vstv %s1675_s8  ;;  %v668_v29 = vmul.f32 %v667_v23, %v1453_v18  ;;  %s1743_s7 = sld [smem:[#allocation2 + $0x8d]]  ;;  %s1748_s8 = sld [smem:[#allocation6 + $0x8b]] }
  0x85   : > { %v630_v31 = vmax.f32 %v629_v20, 0.0  ;;  %v671_v32 = vmul.f32 %v670_v24, %v1455_v19  ;;  %v675_v30 = vmul.f32 %v674_v25, %v1458_v21  ;;  %v678_v33 = vstv %s1678_s10  ;;  %s1745_s29 = sld [smem:[#allocation2 + $0x10d]]  ;;  %s1750_s10 = sld [smem:[#allocation4 + $0xc]] }
  0x86   : > { %v607_v34 = vadd.f32 %v606_v14, %v580_v10  ;;  %v611_v35 = vadd.f32 %v610_v15, %v584_v11  ;;  %v653_v36 = vadd.f32 %v652_v17, %v649_v27  ;;  %v659_v37 = vstv %s1683_s9  ;;  %s1753_s9 = sld [smem:[#allocation2 + $0x18d]] }
  0x87   : > { %v633_v38 = vmul.f32 %v632_v13, %v630_v31  ;;  %v637_v39 = vmul.f32 %v636_v26, %v630_v31  ;;  %v672_v40 = vadd.f32 %v671_v32, %v668_v29  ;;  %v679_v41 = vmul.f32 %v678_v33, %v1460_v22 }
  0x88   : > { %v656_v42 = vadd.f32 %v655_v28, %v653_v36  ;;  %v694_v43 = vstv %s1688_s12  ;;  %v697_v44 = vstv %s1693_s13  ;;  %v701_v45 = vstv %s1695_s28  ;;  %s1758_s12 = sld [smem:[#allocation6 + $0xc]]  ;;  %s1763_s13 = sld [smem:[#allocation2 + $0xe]] }
  0x89   : > { %v663_v46 = vstv %s1698_s14  ;;  %v676_v47 = vadd.f32 %v675_v30, %v672_v40  ;;  %v682_v48 = vstv %s1700_s11  ;;  %v695_v49 = vmul.f32 %v694_v43, %v1453_v18  ;;  %s1768_s28 = sld [smem:[#allocation2 + $0x8e]]  ;;  %s1773_s11 = sld [smem:[#allocation6 + $0x8c]] }
  0x8a   : > { %v657_v50 = vmax.f32 %v656_v42, 0.0  ;;  %v698_v51 = vmul.f32 %v697_v44, %v1455_v19  ;;  %v702_v52 = vmul.f32 %v701_v45, %v1458_v21  ;;  %v705_v53 = vstv %s1703_s15  ;;  %s1770_s14 = sld [smem:[#allocation2 + $0x10e]]  ;;  %s1775_s15 = sld [smem:[#allocation4 + $0xd]] }
  0x8b   : > { %v634_v54 = vadd.f32 %v633_v38, %v607_v34  ;;  %v638_v55 = vadd.f32 %v637_v39, %v611_v35  ;;  %v680_v56 = vadd.f32 %v679_v41, %v676_v47  ;;  %v686_v57 = vstv %s1708_s17  ;;  %s1778_s17 = sld [smem:[#allocation2 + $0x18e]] }
  0x8c   : > { %v660_v58 = vmul.f32 %v659_v37, %v657_v50  ;;  %v664_v59 = vmul.f32 %v663_v46, %v657_v50  ;;  %v699_v60 = vadd.f32 %v698_v51, %v695_v49  ;;  %v706_v61 = vmul.f32 %v705_v53, %v1460_v22 }
  0x8d   : > { %v683_v62 = vadd.f32 %v682_v48, %v680_v56  ;;  %v721_v63 = vstv %s1713_s16  ;;  %v724_v0 = vstv %s1718_s18  ;;  %v728_v1 = vstv %s1720_s25  ;;  %s1783_s16 = sld [smem:[#allocation6 + $0xd]]  ;;  %s1788_s18 = sld [smem:[#allocation2 + $0xf]] }
  0x8e   : > { %v690_v2 = vstv %s1723_s26  ;;  %v703_v3 = vadd.f32 %v702_v52, %v699_v60  ;;  %v709_v4 = vstv %s1725_s27  ;;  %v722_v5 = vmul.f32 %v721_v63, %v1453_v18  ;;  %s1793_s25 = sld [smem:[#allocation2 + $0x8f]]  ;;  %s1798_s27 = sld [smem:[#allocation6 + $0x8d]] }
  0x8f   : > { %v684_v6 = vmax.f32 %v683_v62, 0.0  ;;  %v725_v7 = vmul.f32 %v724_v0, %v1455_v19  ;;  %v729_v8 = vmul.f32 %v728_v1, %v1458_v21  ;;  %v732_v9 = vstv %s1728_s19  ;;  %s1795_s26 = sld [smem:[#allocation2 + $0x10f]]  ;;  %s1800_s19 = sld [smem:[#allocation4 + $0xe]] }
  0x90   : > { %v661_v10 = vadd.f32 %v660_v58, %v634_v54  ;;  %v665_v11 = vadd.f32 %v664_v59, %v638_v55  ;;  %v707_v12 = vadd.f32 %v706_v61, %v703_v3  ;;  %v713_v13 = vstv %s1733_s20  ;;  %s1803_s20 = sld [smem:[#allocation2 + $0x18f]] }
  0x91   : > { %v687_v14 = vmul.f32 %v686_v57, %v684_v6  ;;  %v691_v15 = vmul.f32 %v690_v2, %v684_v6  ;;  %v726_v16 = vadd.f32 %v725_v7, %v722_v5  ;;  %v733_v17 = vmul.f32 %v732_v9, %v1460_v22 }
  0x92   : > { %v710_v20 = vadd.f32 %v709_v4, %v707_v12  ;;  %v748_v23 = vstv %s1738_s24  ;;  %v751_v24 = vstv %s1743_s7  ;;  %v755_v25 = vstv %s1745_s29  ;;  %s1815_s24 = sld [smem:[#allocation6 + $0xe]]  ;;  %s1820_s29 = sld [smem:[#allocation4 + $0xf]] }
  0x93   : > { %v717_v26 = vstv %s1748_s8  ;;  %v730_v27 = vadd.f32 %v729_v8, %v726_v16  ;;  %v736_v28 = vstv %s1750_s10  ;;  %v749_v29 = vmul.f32 %v748_v23, %v1453_v18  ;;  %s1817_s7 = sld [smem:[#allocation6 + $0x8e]]  ;;  %s1117_s8 = sld [smem:[#allocation6 + $0xf]] }
  0x94   : > { %v711_v31 = vmax.f32 %v710_v20, 0.0  ;;  %v752_v32 = vmul.f32 %v751_v24, %v1455_v19  ;;  %v756_v30 = vmul.f32 %v755_v25, %v1458_v21  ;;  %v759_v33 = vstv %s1753_s9  ;;  %s1118_s10 = sld [smem:[#allocation6 + $0x8f]]  ;;  %s1124_s9 = sshll.u32 %s1869_s21, 2 }
  0x95   : > { %v688_v34 = vadd.f32 %v687_v14, %v661_v10  ;;  %v692_v35 = vadd.f32 %v691_v15, %v665_v11  ;;  %v734_v36 = vadd.f32 %v733_v17, %v730_v27  ;;  %v740_v37 = vstv %s1758_s12 }
  0x96   : > { %v714_v38 = vmul.f32 %v713_v13, %v711_v31  ;;  %v718_v39 = vmul.f32 %v717_v26, %v711_v31  ;;  %v753_v40 = vadd.f32 %v752_v32, %v749_v29  ;;  %v760_v41 = vmul.f32 %v759_v33, %v1460_v22 }
  0x97   : > { %v737_v42 = vadd.f32 %v736_v28, %v734_v36  ;;  %v775_v43 = vstv %s1763_s13  ;;  %v778_v44 = vstv %s1768_s28  ;;  %v782_v45 = vstv %s1770_s14  ;;  %s365_s28 = scalar_lea.vmem %s1854_s6, %s1124_s9 }
  0x98   : > { %v744_v46 = vstv %s1773_s11  ;;  %v757_v47 = vadd.f32 %v756_v30, %v753_v40  ;;  %v763_v48 = vstv %s1775_s15  ;;  %v776_v49 = vmul.f32 %v775_v43, %v1453_v18 }
  0x99   : > { %v738_v50 = vmax.f32 %v737_v42, 0.0  ;;  %v779_v51 = vmul.f32 %v778_v44, %v1455_v19  ;;  %v783_v52 = vmul.f32 %v782_v45, %v1458_v21  ;;  %v786_v53 = vstv %s1778_s17 }
  0x9a   : > { %v715_v54 = vadd.f32 %v714_v38, %v688_v34  ;;  %v719_v55 = vadd.f32 %v718_v39, %v692_v35  ;;  %v761_v56 = vadd.f32 %v760_v41, %v757_v47  ;;  %v767_v57 = vstv %s1783_s16 }
  0x9b   : > { %v741_v58 = vmul.f32 %v740_v37, %v738_v50  ;;  %v745_v59 = vmul.f32 %v744_v46, %v738_v50  ;;  %v780_v60 = vadd.f32 %v779_v51, %v776_v49  ;;  %v787_v61 = vmul.f32 %v786_v53, %v1460_v22 }
  0x9c   : > { %v764_v62 = vadd.f32 %v763_v48, %v761_v56  ;;  %v802_v63 = vstv %s1788_s18  ;;  %v805_v0 = vstv %s1793_s25  ;;  %v809_v1 = vstv %s1795_s26 }
  0x9d   : > { %v771_v2 = vstv %s1798_s27  ;;  %v784_v3 = vadd.f32 %v783_v52, %v780_v60  ;;  %v790_v4 = vstv %s1800_s19  ;;  %v803_v5 = vmul.f32 %v802_v63, %v1453_v18 }
  0x9e   : > { %v765_v6 = vmax.f32 %v764_v62, 0.0  ;;  %v806_v7 = vmul.f32 %v805_v0, %v1455_v19  ;;  %v810_v8 = vmul.f32 %v809_v1, %v1458_v21  ;;  %v813_v9 = vstv %s1803_s20 }
  0x9f   : > { %v742_v10 = vadd.f32 %v741_v58, %v715_v54  ;;  %v746_v11 = vadd.f32 %v745_v59, %v719_v55  ;;  %v788_v12 = vadd.f32 %v787_v61, %v784_v3  ;;  %v814_v16 = vmul.f32 %v813_v9, %v1460_v22 }
  0xa0   : > { %v768_v13 = vmul.f32 %v767_v57, %v765_v6  ;;  %v772_v14 = vmul.f32 %v771_v2, %v765_v6  ;;  %v807_v15 = vadd.f32 %v806_v7, %v803_v5  ;;  %v794_v18 = vstv %s1815_s24 }
  0xa1   : > { %v791_v17 = vadd.f32 %v790_v4, %v788_v12  ;;  %v798_v20 = vstv %s1817_s7  ;;  %v817_v19 = vstv %s1820_s29  ;;  %v821_v31 = vstv %s1117_s8 }
  0xa2   : > { %v811_v23 = vadd.f32 %v810_v8, %v807_v15  ;;  %v769_v25 = vadd.f32 %v768_v13, %v742_v10  ;;  %v773_v21 = vadd.f32 %v772_v14, %v746_v11  ;;  %v825_v32 = vstv %s1118_s10 }
  0xa3   : > { %v792_v24 = vmax.f32 %v791_v17, 0.0 }
  0xa4   : > { %v815_v26 = vadd.f32 %v814_v16, %v811_v23 }
  0xa5   : > { %v795_v27 = vmul.f32 %v794_v18, %v792_v24  ;;  %v799_v28 = vmul.f32 %v798_v20, %v792_v24 }
  0xa6   : > { %v818_v29 = vadd.f32 %v817_v19, %v815_v26 }
  0xa7   : > { %v796_v30 = vadd.f32 %v795_v27, %v769_v25  ;;  %v800_v33 = vadd.f32 %v799_v28, %v773_v21 }
  0xa8   : > { %v819_v34 = vmax.f32 %v818_v29, 0.0 }
  0xaa   : > { %v822_v35 = vmul.f32 %v821_v31, %v819_v34  ;;  %v826_v22 = vmul.f32 %v825_v32, %v819_v34 }
  0xac   : > { %v823_v36 = vadd.f32 %v822_v35, %v796_v30  ;;  %v827_v37 = vadd.f32 %v826_v22, %v800_v33 }
  0xae   : > { %v828_v38 = vsub.f32 0.0, %v823_v36  ;;  %v834_v39 = vsub.f32 0.0, %v827_v37 }
  0xb0   : > { %v829_v40 = vmul.f32 1.442695, %v828_v38  ;;  %v835_v41 = vmul.f32 1.442695, %v834_v39 }
  0xb2   : > { %1190 = vpow2.f32 %v829_v40 }
  0xb3   : > { %1192 = vpow2.f32 %v835_v41 }
  0xbc   : > { %v1191_v42 = vpop.eup %1190 }
  0xbd   : > { %v1193_v43 = vpop.eup %1192  ;;  %v831_v44 = vadd.f32 1.0, %v1191_v42 }
  0xbe   : > { %v837_v45 = vadd.f32 1.0, %v1193_v43 }
  0xbf   : > { %1194 = vrcp.f32 %v831_v44 }
  0xc0   : > { %1196 = vrcp.f32 %v837_v45 }
  0xc9   : > { %v1195_v46 = vpop.eup %1194 }
  0xca   : > { %v1197_v47 = vpop.eup %1196  ;;  %833 = vst [vmem:[%s365_s28] sm:$0x3] %v1195_v46 }
  0xcb   : > { %1119 = vst [vmem:[%s365_s28 + $0x2] sm:$0x3] %v1197_v47 }
  0xcc PF: > { %s19_s23 = sadd.s32 1, %s1292_s23   ;;  %s1864_s21 = smov %s1288_s22 }
  0xcd   : > { %p16_p8 = scmp.ge.s32.totalorder %s19_s23, 4   ;;  %s1865_s22 = smov %s1867_s30 }
  0xcf   :  { %18 = sbr.rel (!%p16_p8) target bundleno = 4 (0x4), region = 101 }
  0xd6   :  { %868 = vsyncpa [#allocation3], 1 }
  0xd7   :  { %870 = vsyncpa [#allocation3 + $0x1], 1 }
  0xd8   :  { %871 = vsyncpa [#allocation5], 1 }
  0xd9   :  { %872 = vsyncpa [#allocation8], 1 }

</bundles_post_ra>
